<compile_context>
chip_gen: v7x
topology: tpu7x:2x2x1
jax: 0.10.0
libtpu: 0.0.40
codegen_flags: <defaults>
</compile_context>

<pallas_src>
import functools

import jax
import jax.numpy as jnp
from jax import lax
from jax.experimental import pallas as pl
from jax.experimental.pallas import tpu as pltpu

HIDDEN = 64
LANE = 128


# ----------------------------- Pallas kernel ------------------------------- #

def _sage_layer_kernel(a_ref, dinv_ref, xk_ref, xi_ref, wl_ref, wr_ref, b_ref,
                       o_ref, *, epilogue, num_classes):
    """One fused SAGEConv layer (+ epilogue) over a (row-tile, K-tile) grid.

    out_i = dinv_i * sum_k A_ik @ (X_k @ W_l)  +  X_i @ W_r + b, then relu/log_softmax.
    The f32 output block is resident across K and used directly as the accumulator.
    """
    k = pl.program_id(1)

    @pl.when(k == 0)
    def _init():
        o_ref[...] = jnp.zeros_like(o_ref)

    # Neighbor path, reassociated: project the K tile first (small contraction over
    # the true feature dim), then the N^2 contraction over tile_k. bf16 in, f32 acc.
    yl = jnp.dot(xk_ref[...], wl_ref[...], preferred_element_type=jnp.float32)
    o_ref[...] += jnp.dot(a_ref[...], yl.astype(jnp.bfloat16),
                          preferred_element_type=jnp.float32)

    @pl.when(k == pl.num_programs(1) - 1)
    def _finalize():
        # Root path + bias computed once per row tile; mean normalization via dinv
        # (A holds exact 0/1 in bf16, so the mean itself has no bf16 rounding).
        yr = jnp.dot(xi_ref[...], wr_ref[...],
                     preferred_element_type=jnp.float32) + b_ref[...]
        acc = dinv_ref[...] * o_ref[...] + yr
        if epilogue == "relu":
            o_ref[...] = jnp.maximum(acc, 0.0)
        else:  # "log_softmax": padded class lanes masked out (stable log_softmax)
            lane = lax.broadcasted_iota(jnp.int32, acc.shape, 1)
            masked = jnp.where(lane < num_classes, acc, -jnp.inf)
            m = jnp.max(masked, axis=1, keepdims=True)
            s = masked - m
            lse = jnp.log(jnp.sum(jnp.exp(s), axis=1, keepdims=True))
            o_ref[...] = s - lse


# ------------------------------ Wrappers ----------------------------------- #

def _round_up(v, m):
    return (v + m - 1) // m * m


def sage_layer(a, dinv, x, w_l, w_r, b, *, epilogue, num_classes=0):
    """Fused SAGEConv layer: out = dinv * (A @ (X @ W_l)) + X @ W_r + b, + epilogue."""
    n_pad = a.shape[0]
    f_in = x.shape[1]
    h_out = w_l.shape[1]
    tile_n = min(128, n_pad)                         # keep >=2 row blocks (v7x 2 TCs)
    tile_k = 256 if n_pad % 256 == 0 else 128        # match 256-deep MXU on v6e/v7x

    kernel = functools.partial(_sage_layer_kernel, epilogue=epilogue,
                               num_classes=num_classes)
    return pl.pallas_call(
        kernel,
        out_shape=jax.ShapeDtypeStruct((n_pad, h_out), jnp.float32),
        grid=(n_pad // tile_n, n_pad // tile_k),
        in_specs=[
            pl.BlockSpec((tile_n, tile_k), lambda i, k: (i, k)),   # A (bf16, 0/1)
            pl.BlockSpec((tile_n, 1), lambda i, k: (i, 0)),        # 1/deg (f32)
            pl.BlockSpec((tile_k, f_in), lambda i, k: (k, 0)),     # X_k (bf16)
            pl.BlockSpec((tile_n, f_in), lambda i, k: (i, 0)),     # X_i (bf16)
            pl.BlockSpec((f_in, h_out), lambda i, k: (0, 0)),      # W_l (bf16)
            pl.BlockSpec((f_in, h_out), lambda i, k: (0, 0)),      # W_r (bf16)
            pl.BlockSpec((1, h_out), lambda i, k: (0, 0)),         # b (f32)
        ],
        out_specs=pl.BlockSpec((tile_n, h_out), lambda i, k: (i, 0)),
        compiler_params=pltpu.CompilerParams(
            dimension_semantics=("parallel", "arbitrary")),
    )(a, dinv, x, x, w_l, w_r, b)


def gnn_forward(params, x, edge_index, num_classes):
    n, f = x.shape
    n_pad = _round_up(max(n, LANE), LANE)
    h_pad = _round_up(HIDDEN, LANE)
    c_pad = _round_up(num_classes, LANE)

    # Exact 0/1 adjacency built once at padded size (single scatter + single cast);
    # per-row 1/deg stays f32 and is folded into the kernel finalize.
    src, dst = edge_index[0], edge_index[1]
    adj = jnp.zeros((n_pad, n_pad), jnp.float32).at[dst, src].add(1.0)
    a = adj.astype(jnp.bfloat16)
    deg = jnp.zeros((n_pad,), jnp.float32).at[dst].add(1.0)
    dinv = (1.0 / jnp.maximum(deg, 1.0))[:, None]

    # X padded in rows only; the true F stays as the full last dim (no zero-column
    # MXU work, no padded f32 copy of X in HBM). bf16 once, outside the kernels.
    x_bf = jnp.pad(x, ((0, n_pad - n), (0, 0))).astype(jnp.bfloat16)

    # Layer 1: SAGEConv(F -> 64), fused ReLU.
    wl1 = jnp.pad(params["w_l1"], ((0, 0), (0, h_pad - HIDDEN))).astype(jnp.bfloat16)
    wr1 = jnp.pad(params["w_r1"], ((0, 0), (0, h_pad - HIDDEN))).astype(jnp.bfloat16)
    b1 = jnp.pad(params["b1"], (0, h_pad - HIDDEN))[None, :]
    h1 = sage_layer(a, dinv, x_bf, wl1, wr1, b1, epilogue="relu")

    # TODO(synk): F.dropout(training=self.training) omitted — identity / eval semantics.

    # Layer 2: SAGEConv(64 -> C), fused lane-masked log_softmax.
    h1_bf = h1.astype(jnp.bfloat16)   # single cast; padded hidden cols are exactly 0
    wl2 = jnp.pad(params["w_l2"],
                  ((0, h_pad - HIDDEN), (0, c_pad - num_classes))).astype(jnp.bfloat16)
    wr2 = jnp.pad(params["w_r2"],
                  ((0, h_pad - HIDDEN), (0, c_pad - num_classes))).astype(jnp.bfloat16)
    b2 = jnp.pad(params["b2"], (0, c_pad - num_classes))[None, :]
    out = sage_layer(a, dinv, h1_bf, wl2, wr2, b2, epilogue="log_softmax",
                     num_classes=num_classes)

    return out[:n, :num_classes]


def reference_forward(params, x, edge_index):
    """Pure-JAX f32 reference of the module's forward (eval mode)."""
    n = x.shape[0]
    src, dst = edge_index[0], edge_index[1]
    adj = jnp.zeros((n, n), jnp.float32).at[dst, src].add(1.0)
    deg = jnp.sum(adj, axis=1, keepdims=True)
    a = adj / jnp.maximum(deg, 1.0)
    h = jnp.maximum((a @ x) @ params["w_l1"] + x @ params["w_r1"] + params["b1"], 0.0)
    o = (a @ h) @ params["w_l2"] + h @ params["w_r2"] + params["b2"]
    return jax.nn.log_softmax(o, axis=1)


# ------------------------------ Driver -------------------------------------- #

def init_params(key, num_features, num_classes, hidden=HIDDEN):
    ks = jax.random.split(key, 4)

    def glorot(k, fan_in, fan_out):
        lim = (6.0 / (fan_in + fan_out)) ** 0.5
        return jax.random.uniform(k, (fan_in, fan_out), jnp.float32, -lim, lim)

    return {
        "w_l1": glorot(ks[0], num_features, hidden),   # neighbor path (lin_l)
        "w_r1": glorot(ks[1], num_features, hidden),   # root path     (lin_r)
        "b1": jnp.zeros((hidden,), jnp.float32),
        "w_l2": glorot(ks[2], hidden, num_classes),
        "w_r2": glorot(ks[3], hidden, num_classes),
        "b2": jnp.zeros((num_classes,), jnp.float32),
    }


if __name__ == "__main__":
    key = jax.random.PRNGKey(0)
    num_nodes = 200          # pads to 256 -> 2 row tiles ("parallel") x 1 K tile of 256
    num_features = 16
    num_classes = 8

    k_x, k_p = jax.random.split(key)
    x = jax.random.normal(k_x, (num_nodes, num_features), jnp.float32)

    # Deterministic small graph: bidirectional ring + a few long-range chords.
    src, dst = [], []
    for i in range(num_nodes):
        src += [i, (i + 1) % num_nodes]
        dst += [(i + 1) % num_nodes, i]
    for i in range(0, num_nodes, 4):
        src.append(i)
        dst.append((i + num_nodes // 2) % num_nodes)
    edge_index = jnp.array([src, dst], dtype=jnp.int32)   # (2, E)

    params = init_params(k_p, num_features, num_classes)

    fwd = jax.jit(gnn_forward, static_argnums=(3,))
    out = jax.block_until_ready(fwd(params, x, edge_index, num_classes))

    assert out.shape == (num_nodes, num_classes)
    # log_softmax rows must sum to ~1 in prob space.
    assert bool(jnp.all(jnp.abs(jnp.sum(jnp.exp(out), axis=1) - 1.0) < 1e-4))
    # Match the pure-JAX f32 reference (loose tol: bf16 MXU inputs, f32 accumulation).
    ref = reference_forward(params, x, edge_index)
    assert bool(jnp.max(jnp.abs(out - ref)) < 0.2)
    print("KERNEL_OK")
</pallas_src>

<mosaic_0001>
module attributes {stable_mosaic.version = 11 : i64} {
  func.func @_sage_layer_kernel(%arg0: i32, %arg1: i32, %arg2: memref<128x256xbf16, #tpu.memory_space<vmem>>, %arg3: memref<128x1xf32, #tpu.memory_space<vmem>>, %arg4: memref<256x16xbf16, #tpu.memory_space<vmem>>, %arg5: memref<128x16xbf16, #tpu.memory_space<vmem>>, %arg6: memref<16x128xbf16, #tpu.memory_space<vmem>>, %arg7: memref<16x128xbf16, #tpu.memory_space<vmem>>, %arg8: memref<1x128xf32, #tpu.memory_space<vmem>>, %arg9: memref<128x128xf32, #tpu.memory_space<vmem>>) attributes {dimension_semantics = [#tpu.dimension_semantics<parallel>, #tpu.dimension_semantics<arbitrary>], iteration_bounds = array<i64: 2, 1>, scalar_prefetch = 0 : i64, scratch_operands = 0 : i64, tpu.core_type = #tpu.core_type<tc>, window_params = [{transform_indices = @transform_0, window_bounds = array<i64: 128, 256>}, {transform_indices = @transform_1, window_bounds = array<i64: 128, 1>}, {transform_indices = @transform_2, window_bounds = array<i64: 256, 16>}, {transform_indices = @transform_3, window_bounds = array<i64: 128, 16>}, {pipeline_mode = #tpu.pipeline_mode<synchronous>, transform_indices = @transform_4, window_bounds = array<i64: 16, 128>}, {pipeline_mode = #tpu.pipeline_mode<synchronous>, transform_indices = @transform_5, window_bounds = array<i64: 16, 128>}, {pipeline_mode = #tpu.pipeline_mode<synchronous>, transform_indices = @transform_6, window_bounds = array<i64: 1, 128>}, {transform_indices = @transform_7, window_bounds = array<i64: 128, 128>}]} {
    %c0_i32 = arith.constant 0 : i32
    %0 = arith.cmpi eq, %arg1, %c0_i32 : i32
    %1 = arith.extui %0 : i1 to i32
    %c0_i32_0 = arith.constant 0 : i32
    %2 = arith.cmpi ne, %1, %c0_i32_0 : i32
    scf.if %2 {
      %cst_13 = arith.constant 0.000000e+00 : f32
      %15 = vector.broadcast %cst_13 : f32 to vector<128x128xf32>
      %c0_14 = arith.constant 0 : index
      %c0_15 = arith.constant 0 : index
      %16 = vector.load %arg9[%c0_14, %c0_15] : memref<128x128xf32, #tpu.memory_space<vmem>>, vector<128x128xf32>
      tpu.vector_store %arg9[%c0_14, %c0_15], %15 {strides = array<i32>} : memref<128x128xf32, #tpu.memory_space<vmem>>, vector<128x128xf32>,
    } else {
    }
    %c0 = arith.constant 0 : index
    %c0_1 = arith.constant 0 : index
    %3 = vector.load %arg4[%c0, %c0_1] : memref<256x16xbf16, #tpu.memory_space<vmem>>, vector<256x16xbf16>
    %c0_2 = arith.constant 0 : index
    %c0_3 = arith.constant 0 : index
    %4 = vector.load %arg6[%c0_2, %c0_3] : memref<16x128xbf16, #tpu.memory_space<vmem>>, vector<16x128xbf16>
    %cst = arith.constant dense<0.000000e+00> : vector<256x128xf32>
    %5 = tpu.matmul %3, %4, %cst {dimension_numbers = #tpu.dot_dimension_numbers<[1], [0], [0], [1], [0, 0, 1, 1], [], []>} : vector<256x16xbf16>, vector<16x128xbf16>, vector<256x128xf32> -> vector<256x128xf32>
    %c0_4 = arith.constant 0 : index
    %c0_5 = arith.constant 0 : index
    %6 = vector.load %arg9[%c0_4, %c0_5] : memref<128x128xf32, #tpu.memory_space<vmem>>, vector<128x128xf32>
    %c0_6 = arith.constant 0 : index
    %c0_7 = arith.constant 0 : index
    %7 = vector.load %arg2[%c0_6, %c0_7] : memref<128x256xbf16, #tpu.memory_space<vmem>>, vector<128x256xbf16>
    %8 = arith.truncf %5 : vector<256x128xf32> to vector<256x128xbf16>
    %cst_8 = arith.constant dense<0.000000e+00> : vector<128x128xf32>
    %9 = tpu.matmul %7, %8, %cst_8 {dimension_numbers = #tpu.dot_dimension_numbers<[1], [0], [0], [1], [0, 0, 1, 1], [], []>} : vector<128x256xbf16>, vector<256x128xbf16>, vector<128x128xf32> -> vector<128x128xf32>
    %10 = arith.addf %6, %9 : vector<128x128xf32>
    %c0_9 = arith.constant 0 : index
    %c0_10 = arith.constant 0 : index
    %11 = vector.load %arg9[%c0_9, %c0_10] : memref<128x128xf32, #tpu.memory_space<vmem>>, vector<128x128xf32>
    tpu.vector_store %arg9[%c0_9, %c0_10], %10 {strides = array<i32>} : memref<128x128xf32, #tpu.memory_space<vmem>>, vector<128x128xf32>,
    %c0_i32_11 = arith.constant 0 : i32
    %12 = arith.cmpi eq, %arg1, %c0_i32_11 : i32
    %13 = arith.extui %12 : i1 to i32
    %c0_i32_12 = arith.constant 0 : i32
    %14 = arith.cmpi ne, %13, %c0_i32_12 : i32
    scf.if %14 {
      %c0_13 = arith.constant 0 : index
      %c0_14 = arith.constant 0 : index
      %15 = vector.load %arg5[%c0_13, %c0_14] : memref<128x16xbf16, #tpu.memory_space<vmem>>, vector<128x16xbf16>
      %c0_15 = arith.constant 0 : index
      %c0_16 = arith.constant 0 : index
      %16 = vector.load %arg7[%c0_15, %c0_16] : memref<16x128xbf16, #tpu.memory_space<vmem>>, vector<16x128xbf16>
      %cst_17 = arith.constant dense<0.000000e+00> : vector<128x128xf32>
      %17 = tpu.matmul %15, %16, %cst_17 {dimension_numbers = #tpu.dot_dimension_numbers<[1], [0], [0], [1], [0, 0, 1, 1], [], []>} : vector<128x16xbf16>, vector<16x128xbf16>, vector<128x128xf32> -> vector<128x128xf32>
      %c0_18 = arith.constant 0 : index
      %c0_19 = arith.constant 0 : index
      %18 = vector.load %arg8[%c0_18, %c0_19] : memref<1x128xf32, #tpu.memory_space<vmem>>, vector<1x128xf32>
      %19 = vector.broadcast %18 : vector<1x128xf32> to vector<128x128xf32>
      %20 = arith.addf %17, %19 : vector<128x128xf32>
      %c0_20 = arith.constant 0 : index
      %c0_21 = arith.constant 0 : index
      %21 = vector.load %arg3[%c0_20, %c0_21] : memref<128x1xf32, #tpu.memory_space<vmem>>, vector<128x1xf32>
      %c0_22 = arith.constant 0 : index
      %c0_23 = arith.constant 0 : index
      %22 = vector.load %arg9[%c0_22, %c0_23] : memref<128x128xf32, #tpu.memory_space<vmem>>, vector<128x128xf32>
      %23 = vector.broadcast %21 : vector<128x1xf32> to vector<128x128xf32>
      %24 = arith.mulf %23, %22 : vector<128x128xf32>
      %25 = arith.addf %24, %20 : vector<128x128xf32>
      %cst_24 = arith.constant 0.000000e+00 : f32
      %26 = vector.broadcast %cst_24 : f32 to vector<128x128xf32>
      %27 = arith.maximumf %25, %26 : vector<128x128xf32>
      %c0_25 = arith.constant 0 : index
      %c0_26 = arith.constant 0 : index
      %28 = vector.load %arg9[%c0_25, %c0_26] : memref<128x128xf32, #tpu.memory_space<vmem>>, vector<128x128xf32>
      tpu.vector_store %arg9[%c0_25, %c0_26], %27 {strides = array<i32>} : memref<128x128xf32, #tpu.memory_space<vmem>>, vector<128x128xf32>,
    } else {
    }
    return
  }
  func.func @transform_0(%arg0: i32, %arg1: i32) -> (i32, i32) {
    %c0_i32 = arith.constant 0 : i32
    return %arg0, %arg1 : i32, i32
  }
  func.func @transform_1(%arg0: i32, %arg1: i32) -> (i32, i32) {
    %c0_i32 = arith.constant 0 : i32
    %c0_i32_0 = arith.constant 0 : i32
    return %arg0, %c0_i32 : i32, i32
  }
  func.func @transform_2(%arg0: i32, %arg1: i32) -> (i32, i32) {
    %c0_i32 = arith.constant 0 : i32
    %c0_i32_0 = arith.constant 0 : i32
    return %arg1, %c0_i32 : i32, i32
  }
  func.func @transform_3(%arg0: i32, %arg1: i32) -> (i32, i32) {
    %c0_i32 = arith.constant 0 : i32
    %c0_i32_0 = arith.constant 0 : i32
    return %arg0, %c0_i32 : i32, i32
  }
  func.func @transform_4(%arg0: i32, %arg1: i32) -> (i32, i32) {
    %c0_i32 = arith.constant 0 : i32
    %c0_i32_0 = arith.constant 0 : i32
    %c0_i32_1 = arith.constant 0 : i32
    return %c0_i32, %c0_i32_0 : i32, i32
  }
  func.func @transform_5(%arg0: i32, %arg1: i32) -> (i32, i32) {
    %c0_i32 = arith.constant 0 : i32
    %c0_i32_0 = arith.constant 0 : i32
    %c0_i32_1 = arith.constant 0 : i32
    return %c0_i32, %c0_i32_0 : i32, i32
  }
  func.func @transform_6(%arg0: i32, %arg1: i32) -> (i32, i32) {
    %c0_i32 = arith.constant 0 : i32
    %c0_i32_0 = arith.constant 0 : i32
    %c0_i32_1 = arith.constant 0 : i32
    return %c0_i32, %c0_i32_0 : i32, i32
  }
  func.func @transform_7(%arg0: i32, %arg1: i32) -> (i32, i32) {
    %c0_i32 = arith.constant 0 : i32
    %c0_i32_0 = arith.constant 0 : i32
    return %arg0, %c0_i32 : i32, i32
  }
}

module attributes {stable_mosaic.version = 11 : i64} {
  func.func @_sage_layer_kernel(%arg0: i32, %arg1: i32, %arg2: memref<128x256xbf16, #tpu.memory_space<vmem>>, %arg3: memref<128x1xf32, #tpu.memory_space<vmem>>, %arg4: memref<256x128xbf16, #tpu.memory_space<vmem>>, %arg5: memref<128x128xbf16, #tpu.memory_space<vmem>>, %arg6: memref<128x128xbf16, #tpu.memory_space<vmem>>, %arg7: memref<128x128xbf16, #tpu.memory_space<vmem>>, %arg8: memref<1x128xf32, #tpu.memory_space<vmem>>, %arg9: memref<128x128xf32, #tpu.memory_space<vmem>>) attributes {dimension_semantics = [#tpu.dimension_semantics<parallel>, #tpu.dimension_semantics<arbitrary>], iteration_bounds = array<i64: 2, 1>, scalar_prefetch = 0 : i64, scratch_operands = 0 : i64, tpu.core_type = #tpu.core_type<tc>, window_params = [{transform_indices = @transform_0, window_bounds = array<i64: 128, 256>}, {transform_indices = @transform_1, window_bounds = array<i64: 128, 1>}, {transform_indices = @transform_2, window_bounds = array<i64: 256, 128>}, {transform_indices = @transform_3, window_bounds = array<i64: 128, 128>}, {pipeline_mode = #tpu.pipeline_mode<synchronous>, transform_indices = @transform_4, window_bounds = array<i64: 128, 128>}, {pipeline_mode = #tpu.pipeline_mode<synchronous>, transform_indices = @transform_5, window_bounds = array<i64: 128, 128>}, {pipeline_mode = #tpu.pipeline_mode<synchronous>, transform_indices = @transform_6, window_bounds = array<i64: 1, 128>}, {transform_indices = @transform_7, window_bounds = array<i64: 128, 128>}]} {
    %c0_i32 = arith.constant 0 : i32
    %0 = arith.cmpi eq, %arg1, %c0_i32 : i32
    %1 = arith.extui %0 : i1 to i32
    %c0_i32_0 = arith.constant 0 : i32
    %2 = arith.cmpi ne, %1, %c0_i32_0 : i32
    scf.if %2 {
      %cst_13 = arith.constant 0.000000e+00 : f32
      %15 = vector.broadcast %cst_13 : f32 to vector<128x128xf32>
      %c0_14 = arith.constant 0 : index
      %c0_15 = arith.constant 0 : index
      %16 = vector.load %arg9[%c0_14, %c0_15] : memref<128x128xf32, #tpu.memory_space<vmem>>, vector<128x128xf32>
      tpu.vector_store %arg9[%c0_14, %c0_15], %15 {strides = array<i32>} : memref<128x128xf32, #tpu.memory_space<vmem>>, vector<128x128xf32>,
    } else {
    }
    %c0 = arith.constant 0 : index
    %c0_1 = arith.constant 0 : index
    %3 = vector.load %arg4[%c0, %c0_1] : memref<256x128xbf16, #tpu.memory_space<vmem>>, vector<256x128xbf16>
    %c0_2 = arith.constant 0 : index
    %c0_3 = arith.constant 0 : index
    %4 = vector.load %arg6[%c0_2, %c0_3] : memref<128x128xbf16, #tpu.memory_space<vmem>>, vector<128x128xbf16>
    %cst = arith.constant dense<0.000000e+00> : vector<256x128xf32>
    %5 = tpu.matmul %3, %4, %cst {dimension_numbers = #tpu.dot_dimension_numbers<[1], [0], [0], [1], [0, 0, 1, 1], [], []>} : vector<256x128xbf16>, vector<128x128xbf16>, vector<256x128xf32> -> vector<256x128xf32>
    %c0_4 = arith.constant 0 : index
    %c0_5 = arith.constant 0 : index
    %6 = vector.load %arg9[%c0_4, %c0_5] : memref<128x128xf32, #tpu.memory_space<vmem>>, vector<128x128xf32>
    %c0_6 = arith.constant 0 : index
    %c0_7 = arith.constant 0 : index
    %7 = vector.load %arg2[%c0_6, %c0_7] : memref<128x256xbf16, #tpu.memory_space<vmem>>, vector<128x256xbf16>
    %8 = arith.truncf %5 : vector<256x128xf32> to vector<256x128xbf16>
    %cst_8 = arith.constant dense<0.000000e+00> : vector<128x128xf32>
    %9 = tpu.matmul %7, %8, %cst_8 {dimension_numbers = #tpu.dot_dimension_numbers<[1], [0], [0], [1], [0, 0, 1, 1], [], []>} : vector<128x256xbf16>, vector<256x128xbf16>, vector<128x128xf32> -> vector<128x128xf32>
    %10 = arith.addf %6, %9 : vector<128x128xf32>
    %c0_9 = arith.constant 0 : index
    %c0_10 = arith.constant 0 : index
    %11 = vector.load %arg9[%c0_9, %c0_10] : memref<128x128xf32, #tpu.memory_space<vmem>>, vector<128x128xf32>
    tpu.vector_store %arg9[%c0_9, %c0_10], %10 {strides = array<i32>} : memref<128x128xf32, #tpu.memory_space<vmem>>, vector<128x128xf32>,
    %c0_i32_11 = arith.constant 0 : i32
    %12 = arith.cmpi eq, %arg1, %c0_i32_11 : i32
    %13 = arith.extui %12 : i1 to i32
    %c0_i32_12 = arith.constant 0 : i32
    %14 = arith.cmpi ne, %13, %c0_i32_12 : i32
    scf.if %14 {
      %c0_13 = arith.constant 0 : index
      %c0_14 = arith.constant 0 : index
      %15 = vector.load %arg5[%c0_13, %c0_14] : memref<128x128xbf16, #tpu.memory_space<vmem>>, vector<128x128xbf16>
      %c0_15 = arith.constant 0 : index
      %c0_16 = arith.constant 0 : index
      %16 = vector.load %arg7[%c0_15, %c0_16] : memref<128x128xbf16, #tpu.memory_space<vmem>>, vector<128x128xbf16>
      %cst_17 = arith.constant dense<0.000000e+00> : vector<128x128xf32>
      %17 = tpu.matmul %15, %16, %cst_17 {dimension_numbers = #tpu.dot_dimension_numbers<[1], [0], [0], [1], [0, 0, 1, 1], [], []>} : vector<128x128xbf16>, vector<128x128xbf16>, vector<128x128xf32> -> vector<128x128xf32>
      %c0_18 = arith.constant 0 : index
      %c0_19 = arith.constant 0 : index
      %18 = vector.load %arg8[%c0_18, %c0_19] : memref<1x128xf32, #tpu.memory_space<vmem>>, vector<1x128xf32>
      %19 = vector.broadcast %18 : vector<1x128xf32> to vector<128x128xf32>
      %20 = arith.addf %17, %19 : vector<128x128xf32>
      %c0_20 = arith.constant 0 : index
      %c0_21 = arith.constant 0 : index
      %21 = vector.load %arg3[%c0_20, %c0_21] : memref<128x1xf32, #tpu.memory_space<vmem>>, vector<128x1xf32>
      %c0_22 = arith.constant 0 : index
      %c0_23 = arith.constant 0 : index
      %22 = vector.load %arg9[%c0_22, %c0_23] : memref<128x128xf32, #tpu.memory_space<vmem>>, vector<128x128xf32>
      %23 = vector.broadcast %21 : vector<128x1xf32> to vector<128x128xf32>
      %24 = arith.mulf %23, %22 : vector<128x128xf32>
      %25 = arith.addf %24, %20 : vector<128x128xf32>
      %26 = tpu.iota {dimensions = array<i32: 1>} : vector<128x128xi32>
      %c8_i32 = arith.constant 8 : i32
      %27 = vector.broadcast %c8_i32 : i32 to vector<128x128xi32>
      %28 = arith.cmpi slt, %26, %27 : vector<128x128xi32>
      %cst_24 = arith.constant 0xFF800000 : f32
      %29 = vector.broadcast %cst_24 : f32 to vector<128x128xf32>
      %30 = arith.select %28, %25, %29 : vector<128x128xi1>, vector<128x128xf32>
      %cst_25 = arith.constant dense<0xFF800000> : vector<128xf32>
      %31 = vector.multi_reduction <maximumf>, %30, %cst_25 [1] : vector<128x128xf32> to vector<128xf32>
      %32 = vector.shape_cast %31 : vector<128xf32> to vector<128x1xf32>
      %33 = vector.broadcast %32 : vector<128x1xf32> to vector<128x128xf32>
      %34 = arith.subf %30, %33 : vector<128x128xf32>
      %35 = math.exp %34 : vector<128x128xf32>
      %cst_26 = arith.constant dense<0.000000e+00> : vector<128xf32>
      %36 = vector.multi_reduction <add>, %35, %cst_26 [1] : vector<128x128xf32> to vector<128xf32>
      %37 = vector.shape_cast %36 : vector<128xf32> to vector<128x1xf32>
      %38 = math.log %37 : vector<128x1xf32>
      %39 = vector.broadcast %38 : vector<128x1xf32> to vector<128x128xf32>
      %40 = arith.subf %34, %39 : vector<128x128xf32>
      %c0_27 = arith.constant 0 : index
      %c0_28 = arith.constant 0 : index
      %41 = vector.load %arg9[%c0_27, %c0_28] : memref<128x128xf32, #tpu.memory_space<vmem>>, vector<128x128xf32>
      tpu.vector_store %arg9[%c0_27, %c0_28], %40 {strides = array<i32>} : memref<128x128xf32, #tpu.memory_space<vmem>>, vector<128x128xf32>,
    } else {
    }
    return
  }
  func.func @transform_0(%arg0: i32, %arg1: i32) -> (i32, i32) {
    %c0_i32 = arith.constant 0 : i32
    return %arg0, %arg1 : i32, i32
  }
  func.func @transform_1(%arg0: i32, %arg1: i32) -> (i32, i32) {
    %c0_i32 = arith.constant 0 : i32
    %c0_i32_0 = arith.constant 0 : i32
    return %arg0, %c0_i32 : i32, i32
  }
  func.func @transform_2(%arg0: i32, %arg1: i32) -> (i32, i32) {
    %c0_i32 = arith.constant 0 : i32
    %c0_i32_0 = arith.constant 0 : i32
    return %arg1, %c0_i32 : i32, i32
  }
  func.func @transform_3(%arg0: i32, %arg1: i32) -> (i32, i32) {
    %c0_i32 = arith.constant 0 : i32
    %c0_i32_0 = arith.constant 0 : i32
    return %arg0, %c0_i32 : i32, i32
  }
  func.func @transform_4(%arg0: i32, %arg1: i32) -> (i32, i32) {
    %c0_i32 = arith.constant 0 : i32
    %c0_i32_0 = arith.constant 0 : i32
    %c0_i32_1 = arith.constant 0 : i32
    return %c0_i32, %c0_i32_0 : i32, i32
  }
  func.func @transform_5(%arg0: i32, %arg1: i32) -> (i32, i32) {
    %c0_i32 = arith.constant 0 : i32
    %c0_i32_0 = arith.constant 0 : i32
    %c0_i32_1 = arith.constant 0 : i32
    return %c0_i32, %c0_i32_0 : i32, i32
  }
  func.func @transform_6(%arg0: i32, %arg1: i32) -> (i32, i32) {
    %c0_i32 = arith.constant 0 : i32
    %c0_i32_0 = arith.constant 0 : i32
    %c0_i32_1 = arith.constant 0 : i32
    return %c0_i32, %c0_i32_0 : i32, i32
  }
  func.func @transform_7(%arg0: i32, %arg1: i32) -> (i32, i32) {
    %c0_i32 = arith.constant 0 : i32
    %c0_i32_0 = arith.constant 0 : i32
    return %arg0, %c0_i32 : i32, i32
  }
}

</mosaic_0001>

<bundles_post_ra>
// kernel: gnn_forward.2
= control target key start
LH: loop header
LB: loop body
LE: loop exit
PB: predicated region body
PF: predicated region fallthrough
CT: control target
= control target key end

     0   :  { %s1838_s24 = smov 0   ;;  %s1840_s25 = smov 0   ;;  %s2074_s0 = inlined_call_operand.vmem [shape: bf16[256,256], index: 0, kind: input, shape index: {}]   ;;  %s2075_s1 = inlined_call_operand.vmem [shape: f32[256,1], index: 1, kind: input, shape index: {}]   ;;  %s2076_s2 = inlined_call_operand.vmem [shape: bf16[256,16], index: 2, kind: input, shape index: {}, may-alias: {2,3}]   ;;  %s2077_s3 = inlined_call_operand.vmem [shape: bf16[256,16], index: 3, kind: input, shape index: {}, may-alias: {2,3}]   ;;  %s2078_s4 = inlined_call_operand.vmem [shape: bf16[16,128], index: 4, kind: input, shape index: {}]   ;;  %s2079_s5 = inlined_call_operand.vmem [shape: bf16[16,128], index: 5, kind: input, shape index: {}]   ;;  %s2080_s6 = inlined_call_operand.vmem [shape: f32[1,128], index: 6, kind: input, shape index: {}]   ;;  %s2081_s7 = inlined_call_operand.vmem [shape: f32[256,128], index: 7, kind: output, shape index: {}]  }
   0x1   :  { %s1842_s26 = smov 0  }
   0x2 LB: > { %s29_s27 = sadd.s32 1, %s1791_s25  ;;  %p1473_p0 = scmp.ge.s32.totalorder %s1795_s26, 1  ;;  %s1795_s26 = sphi %s1842_s26, %s17_s26   ;;  %s1791_s25 = sphi %s1840_s25, %s2083_s25   ;;  %s1787_s24 = sphi %s1838_s24, %s2082_s24  }
   0x3   : > { %p31_p1 = scmp.ge.s32.totalorder %s29_s27, 2  ;;  %p291_p2 = scmp.lt.s32.totalorder %s1795_s26, 3 }
   0x5   : > { %s2085_s27 = smov (%p31_p1, %s29_s27), 0  ;;  %p292_p3 = pnand %p1473_p0, %p291_p2 }
   0x6   : > { %v1723_v0 = vld [vmem:[%s2078_s4] sm:$0xff] (!%p292_p3)   ;;  %vm520_vm0 = vcmask (!%p292_p3), 130048   ;;  %v1725_v2 = vld [vmem:[%s2076_s2 + $0x8] sm:$0xff] (!%p292_p3)   ;;  %v1726_v3 = vld [vmem:[%s2076_s2 + $0x10] sm:$0xff] (!%p292_p3)   ;;  %s1474_s22 = sshll.u32 (!%p292_p3), %s1787_s24, 4  ;;  %v1797_v27 = vmov (!%p292_p3), 0  }
   0x7   : > { %295 = sbr.rel (%p292_p3) target bundleno = 572 (0x23c), region = 48  ;;  %v1724_v1 = vld [vmem:[%s2076_s2] sm:$0xff] (!%p292_p3)   ;;  %1643 = vmatprep.subr.bf16.mxu0 (!%p292_p3), %v1723_v0  ;;  %v1727_v4 = vld [vmem:[%s2076_s2 + $0x18] sm:$0xff] (!%p292_p3)   ;;  %v1729_v6 = vld [vmem:[%s2076_s2 + $0x28] sm:$0xff] (!%p292_p3)   ;;  %p345_p4 = scmp.lt.s32.totalorder (!%p292_p3), %s1474_s22, 31  ;;  %1721 = vset.pattern.permute.xlu0 (!%p292_p3), %v1797_v27 }
   0x8   : > { %1644 = vmatpush3.bf16.msra.mxu0 (!%p292_p3), %v1723_v0  ;;  %1645 = vmatprep.mubr.msk.bf16.mxu0 (!%p292_p3), %vm520_vm0, %v1724_v1  ;;  %v1728_v5 = vld [vmem:[%s2076_s2 + $0x20] sm:$0xff] (!%p292_p3)   ;;  %v1730_v7 = vld [vmem:[%s2076_s2 + $0x30] sm:$0xff] (!%p292_p3)   ;;  %v1731_v8 = vld [vmem:[%s2076_s2 + $0x38] sm:$0xff] (!%p292_p3)  }
   0x9   : > { %v1732_v9 = vld [vmem:[%s2076_s2 + $0x40] sm:$0xff] (!%p292_p3)   ;;  %v1733_v10 = vld [vmem:[%s2076_s2 + $0x48] sm:$0xff] (!%p292_p3)   ;;  %v1734_v11 = vld [vmem:[%s2076_s2 + $0x50] sm:$0xff] (!%p292_p3)   ;;  %1722 = vset.pattern.permute.xlu1 (!%p292_p3), %v1797_v27 }
   0xa   : > { %v1735_v12 = vld [vmem:[%s2076_s2 + $0x58] sm:$0xff] (!%p292_p3)   ;;  %v1736_v13 = vld [vmem:[%s2076_s2 + $0x60] sm:$0xff] (!%p292_p3)   ;;  %v1737_v14 = vld [vmem:[%s2076_s2 + $0x68] sm:$0xff] (!%p292_p3)  }
   0xb   : > { %1646 = vmatmul.mubr.msk.bf16.vlgmr.msra.gmra.mrb[0].mxu0 (!%p292_p3), %vm520_vm0, %v1725_v2  ;;  %v1738_v15 = vld [vmem:[%s2076_s2 + $0x70] sm:$0xff] (!%p292_p3)   ;;  %v1739_v16 = vld [vmem:[%s2076_s2 + $0x78] sm:$0xff] (!%p292_p3)   ;;  %v1740_v17 = vld [vmem:[%s2079_s5] sm:$0xff] (!%p292_p3)  }
   0xc   : > { %1649 = vmatprep.mubr.msk.bf16.mxu0 (!%p292_p3), %vm520_vm0, %v1726_v3  ;;  %1677 = vmatprep.subr.bf16.mxu0 (!%p292_p3), %v1740_v17 }
   0xd   : > { %1678 = vmatpush3.bf16.msra.mxu0 (!%p292_p3), %v1740_v17 }
   0xe   : > { %s2087_s22 = smov (!%p345_p4, %s1474_s22), 31 }
   0xf   : > { %s1929_s23 = sshll.u32 %s2087_s22, 3  ;;  %s1480_s8 = sshll.u32 %s2087_s22, 2 }
  0x10   : > { %s1935_s30 = scalar_lea.vmem %s2074_s0, %s1929_s23  ;;  %s371_s11 = scalar_lea.vmem %s2077_s3, %s1480_s8 }
  0x11   : > { %v1743_v18 = vld [vmem:[%s1935_s30 + $0x4] ss:$8 sps:$4 sm:$0xff]   ;;  %v1755_v21 = vld [vmem:[%s371_s11 + $0x10] sm:$0xff]   ;;  %v1756_v22 = vld [vmem:[%s371_s11 + $0x18] sm:$0xff]   ;;  %s1953_s13 = scalar_lea.vmem %s2075_s1, %s1929_s23  ;;  %s2023_s18 = scalar_lea.vmem %s2081_s7, %s1929_s23 }
  0x12   : > { %890 = vmatprep.mubr.bf16.mxu1 %v1743_v18  ;;  %v1747_v19 = vld [vmem:[%s371_s11] sm:$0xff]   ;;  %v1748_v20 = vld [vmem:[%s371_s11 + $0x8] sm:$0xff]   ;;  %v1771_v25 = vld [vmem:[%s371_s11 + $0x30] sm:$0xff]  }
  0x13   : > { %1650 = vmatmul.mubr.msk.bf16.gmra.mrb[4].mxu0 %vm520_vm0, %v1727_v4  ;;  %v1763_v23 = vld [vmem:[%s371_s11 + $0x20] sm:$0xff]   ;;  %v1764_v24 = vld [vmem:[%s371_s11 + $0x28] sm:$0xff]   ;;  %v1772_v26 = vld [vmem:[%s371_s11 + $0x38] sm:$0xff]  }
  0x14   : > { %1653 = vmatprep.mubr.msk.bf16.mxu0 %vm520_vm0, %v1728_v5  ;;  %v1182_v28 = vld [vmem:[%s1953_s13] sm:$0xff]  ;;  %v1184_v29 = vld [vmem:[%s1953_s13 + $0x10] sm:$0xff]  ;;  %v1183_v32 = vld [vmem:[%s1953_s13 + $0x8] sm:$0xff] }
  0x15   : > { %1216 = vperm.xlu0 %1721, %v1182_v28   ;;  %1226 = vperm.xlu1 %1722, %v1184_v29   ;;  %v1185_v33 = vld [vmem:[%s1953_s13 + $0x18] sm:$0xff]  ;;  %v1187_v38 = vld [vmem:[%s1953_s13 + $0x28] sm:$0xff]  ;;  %v1186_v39 = vld [vmem:[%s1953_s13 + $0x20] sm:$0xff] }
  0x16   : > { %v1189_v42 = vld [vmem:[%s1953_s13 + $0x38] sm:$0xff]  ;;  %v1188_v43 = vld [vmem:[%s1953_s13 + $0x30] sm:$0xff]  ;;  %v1191_v48 = vld [vmem:[%s1953_s13 + $0x48] sm:$0xff] }
  0x17   : > { %v1190_v49 = vld [vmem:[%s1953_s13 + $0x40] sm:$0xff]  ;;  %v1193_v52 = vld [vmem:[%s1953_s13 + $0x58] sm:$0xff]  ;;  %v1192_v53 = vld [vmem:[%s1953_s13 + $0x50] sm:$0xff] }
  0x18   : > { %v1195_v58 = vld [vmem:[%s1953_s13 + $0x68] sm:$0xff]  ;;  %v1194_v59 = vld [vmem:[%s1953_s13 + $0x60] sm:$0xff]  ;;  %v1197_v62 = vld [vmem:[%s1953_s13 + $0x78] sm:$0xff] }
  0x19   : > { %1221 = vperm.xlu0 %1721, %v1183_v32   ;;  %1231 = vperm.xlu1 %1722, %v1185_v33   ;;  %v1196_v63 = vld [vmem:[%s1953_s13 + $0x70] sm:$0xff]  ;;  %v1741_v28 = vld [vmem:[%s1935_s30] ss:$8 sps:$4 sm:$0xff]  }
  0x1a   : > { %v1744_v29 = vld [vmem:[%s1935_s30 + $0x14] ss:$8 sps:$4 sm:$0xff]   ;;  %v1751_v32 = vld [vmem:[%s1935_s30 + $0x20] ss:$8 sps:$4 sm:$0xff]  }
  0x1b   : > { %1654 = vmatmul.mubr.msk.bf16.gmra.mrb[8].mxu0 %vm520_vm0, %v1729_v6  ;;  %v1752_v33 = vld [vmem:[%s1935_s30 + $0x34] ss:$8 sps:$4 sm:$0xff]  }
  0x1c   : > { %1657 = vmatprep.mubr.msk.bf16.mxu0 %vm520_vm0, %v1730_v7 }
  0x1d   : > { %1241 = vperm.xlu1 %1722, %v1187_v38   ;;  %1236 = vperm.xlu0 %1721, %v1186_v39   ;;  %v1762_v38 = vld [vmem:[%s1935_s30 + $0x50] ss:$8 sps:$4 sm:$0xff]   ;;  %v1765_v39 = vld [vmem:[%s1935_s30 + $0x64] ss:$8 sps:$4 sm:$0xff]  }
  0x21   : > { %1251 = vperm.xlu1 %1722, %v1189_v42   ;;  %1246 = vperm.xlu0 %1721, %v1188_v43   ;;  %v1770_v42 = vld [vmem:[%s1935_s30 + $0x70] ss:$8 sps:$4 sm:$0xff]  }
  0x23   : > { %1658 = vmatmul.mubr.msk.bf16.gmra.mrb[12].mxu0 %vm520_vm0, %v1731_v8 }
  0x24   : > { %1661 = vmatprep.mubr.msk.bf16.mxu0 %vm520_vm0, %v1732_v9 }
  0x25   : > { %1261 = vperm.xlu1 %1722, %v1191_v48   ;;  %1256 = vperm.xlu0 %1721, %v1190_v49  }
  0x29   : > { %1271 = vperm.xlu1 %1722, %v1193_v52   ;;  %1266 = vperm.xlu0 %1721, %v1192_v53  }
  0x2b   : > { %1662 = vmatmul.mubr.msk.bf16.gmra.mrb[16].mxu0 %vm520_vm0, %v1733_v10 }
  0x2c   : > { %1665 = vmatprep.mubr.msk.bf16.mxu0 %vm520_vm0, %v1734_v11 }
  0x2d   : > { %1281 = vperm.xlu1 %1722, %v1195_v58   ;;  %1276 = vperm.xlu0 %1721, %v1194_v59  }
  0x31   : > { %1291 = vperm.xlu1 %1722, %v1197_v62   ;;  %1286 = vperm.xlu0 %1721, %v1196_v63   ;;  %v2015_v62 = vld [vmem:[%s2080_s6] ss:$0 sm:$0xff] }
  0x33   : > { %1666 = vmatmul.mubr.msk.bf16.gmra.mrb[20].mxu0 %vm520_vm0, %v1735_v12 }
  0x34   : > { %1669 = vmatprep.mubr.msk.bf16.mxu0 %vm520_vm0, %v1736_v13 }
  0x3b   : > { %1670 = vmatmul.mubr.msk.bf16.gmra.mrb[24].mxu0 %vm520_vm0, %v1737_v14 }
  0x3c   : > { %1673 = vmatprep.mubr.msk.bf16.mxu0 %vm520_vm0, %v1738_v15 }
  0x43   : > { %1674 = vmatmul.mubr.msk.bf16.gmra.mrb[28].mxu0 %vm520_vm0, %v1739_v16 }
  0x44   : > { %1679 = vmatprep.mubr.msk.bf16.mxu0 %vm520_vm0, %v1747_v19 }
  0x4b   : > { %1680 = vmatmul.mubr.msk.bf16.vlgmr.msra.gmra.mrb[32].mxu0 %vm520_vm0, %v1748_v20 }
  0x4c   : > { %1683 = vmatprep.mubr.msk.bf16.mxu0 %vm520_vm0, %v1755_v21 }
  0x53   : > { %1684 = vmatmul.mubr.msk.bf16.gmra.mrb[36].mxu0 %vm520_vm0, %v1756_v22 }
  0x54   : > { %1687 = vmatprep.mubr.msk.bf16.mxu0 %vm520_vm0, %v1763_v23 }
  0x5b   : > { %1688 = vmatmul.mubr.msk.bf16.gmra.mrb[40].mxu0 %vm520_vm0, %v1764_v24 }
  0x5c   : > { %1691 = vmatprep.mubr.msk.bf16.mxu0 %vm520_vm0, %v1771_v25 }
  0x63   : > { %1692 = vmatmul.mubr.msk.bf16.gmra.mrb[44].mxu0 %vm520_vm0, %v1772_v26 }
  0x94   : > { %v1217_v59 = vpop.permute.xlu0 %1216 }
  0xde   : > { %v1957_v30 = vpop.f32.mrb[0].mxu0 }
  0xdf   : > { %v603_v31 = vpop.f32.mrb[1].mxu0 }
  0xe0   : > { %v1648_v34 = vpop.f32.mrb[2].mxu0 }
  0xe1   : > { %v763_v35 = vpack.c.bf16 %v1648_v34, %v1957_v30  ;;  %v606_v36 = vpop.f32.mrb[3].mxu0  ;;  %v1746_v30 = vld [vmem:[%s1935_s30 + $0x10] ss:$8 sps:$4 sm:$0xff]  }
  0xe2   : > { %v762_v37 = vpack.c.bf16 %v606_v36, %v603_v31  ;;  %v1749_v31 = vld [vmem:[%s1935_s30 + $0x24] ss:$8 sps:$4 sm:$0xff]   ;;  %v1754_v34 = vld [vmem:[%s1935_s30 + $0x30] ss:$8 sps:$4 sm:$0xff]   ;;  %v1759_v36 = vld [vmem:[%s1935_s30 + $0x40] ss:$8 sps:$4 sm:$0xff]  }
  0xe6   : > { %v1964_v40 = vpop.f32.mrb[4].mxu0 }
  0xe7   : > { %v619_v41 = vpop.f32.mrb[5].mxu0 }
  0xe8   : > { %v1652_v44 = vpop.f32.mrb[6].mxu0 }
  0xe9   : > { %v765_v45 = vpack.c.bf16 %v1652_v44, %v1964_v40  ;;  %v622_v46 = vpop.f32.mrb[7].mxu0  ;;  %v1767_v40 = vld [vmem:[%s1935_s30 + $0x60] ss:$8 sps:$4 sm:$0xff]  }
  0xea   : > { %v764_v47 = vpack.c.bf16 %v622_v46, %v619_v41  ;;  %v1768_v41 = vld [vmem:[%s1935_s30 + $0x74] ss:$8 sps:$4 sm:$0xff]  }
  0xee   : > { %v1655_v50 = vpop.f32.mrb[8].mxu0 }
  0xef   : > { %v635_v51 = vpop.f32.mrb[9].mxu0 }
  0xf0   : > { %v1656_v54 = vpop.f32.mrb[10].mxu0 }
  0xf1   : > { %v767_v55 = vpack.c.bf16 %v1656_v54, %v1655_v50  ;;  %v638_v56 = vpop.f32.mrb[11].mxu0 }
  0xf2   : > { %v766_v57 = vpack.c.bf16 %v638_v56, %v635_v51 }
  0xf6   : > { %v1659_v60 = vpop.f32.mrb[12].mxu0 }
  0xf7   : > { %v651_v61 = vpop.f32.mrb[13].mxu0 }
  0xf8   : > { %v1660_v0 = vpop.f32.mrb[14].mxu0 }
  0xf9   : > { %v769_v1 = vpack.c.bf16 %v1660_v0, %v1659_v60  ;;  %v654_v2 = vpop.f32.mrb[15].mxu0 }
  0xfa   : > { %v768_v3 = vpack.c.bf16 %v654_v2, %v651_v61 }
  0xfe   : > { %v1663_v4 = vpop.f32.mrb[16].mxu0 }
  0xff   : > { %v667_v5 = vpop.f32.mrb[17].mxu0 }
 0x100   : > { %v1664_v6 = vpop.f32.mrb[18].mxu0 }
 0x101   : > { %v771_v7 = vpack.c.bf16 %v1664_v6, %v1663_v4  ;;  %v670_v8 = vpop.f32.mrb[19].mxu0  ;;  %v1222_v4 = vpop.permute.xlu0 %1221 }
 0x102   : > { %v770_v9 = vpack.c.bf16 %v670_v8, %v667_v5 }
 0x104   : > { %1570 = vmatprep.subr.bf16.mxu1 %v770_v9 }
 0x105   : > { %1571 = vmatpush3.bf16.msra.mxu1 %v762_v37  ;;  %v1760_v37 = vld [vmem:[%s1935_s30 + $0x54] ss:$8 sps:$4 sm:$0xff]  }
 0x106   : > { %v1667_v10 = vpop.f32.mrb[20].mxu0  ;;  %1572 = vmatprep.subr.bf16.mxu1 %v771_v7 }
 0x107   : > { %v683_v11 = vpop.f32.mrb[21].mxu0 }
 0x108   : > { %v1668_v12 = vpop.f32.mrb[22].mxu0 }
 0x109   : > { %v773_v13 = vpack.c.bf16 %v1668_v12, %v1667_v10  ;;  %v686_v14 = vpop.f32.mrb[23].mxu0  ;;  %1573 = vmatpush3.bf16.msra.mxu1 %v763_v35  ;;  %v1757_v35 = vld [vmem:[%s1935_s30 + $0x44] ss:$8 sps:$4 sm:$0xff]  }
 0x10a   : > { %v772_v15 = vpack.c.bf16 %v686_v14, %v683_v11  ;;  %v1227_v11 = vpop.permute.xlu1 %1226 }
 0x10c   : > { %1574 = vmatprep.subr.bf16.mxu1 %v772_v15 }
 0x10d   : > { %1575 = vmatpush3.bf16.msra.mxu1 %v764_v47 }
 0x10e   : > { %v1671_v16 = vpop.f32.mrb[24].mxu0  ;;  %1576 = vmatprep.subr.bf16.mxu1 %v773_v13 }
 0x10f   : > { %v699_v17 = vpop.f32.mrb[25].mxu0 }
 0x110   : > { %v1672_v18 = vpop.f32.mrb[26].mxu0 }
 0x111   : > { %v775_v19 = vpack.c.bf16 %v1672_v18, %v1671_v16  ;;  %v702_v20 = vpop.f32.mrb[27].mxu0  ;;  %1577 = vmatpush3.bf16.msra.mxu1 %v765_v45 }
 0x112   : > { %v774_v21 = vpack.c.bf16 %v702_v20, %v699_v17 }
 0x114   : > { %1578 = vmatprep.subr.bf16.mxu1 %v774_v21 }
 0x115   : > { %1579 = vmatpush3.bf16.msra.mxu1 %v766_v57 }
 0x116   : > { %v1675_v22 = vpop.f32.mrb[28].mxu0  ;;  %1580 = vmatprep.subr.bf16.mxu1 %v775_v19 }
 0x117   : > { %v715_v23 = vpop.f32.mrb[29].mxu0 }
 0x118   : > { %v1676_v24 = vpop.f32.mrb[30].mxu0 }
 0x119   : > { %v777_v25 = vpack.c.bf16 %v1676_v24, %v1675_v22  ;;  %v718_v26 = vpop.f32.mrb[31].mxu0  ;;  %1581 = vmatpush3.bf16.msra.mxu1 %v767_v55  ;;  %v1232_v22 = vpop.permute.xlu1 %1231 }
 0x11a   : > { %v776_v27 = vpack.c.bf16 %v718_v26, %v715_v23 }
 0x11c   : > { %1582 = vmatprep.subr.bf16.mxu1 %v776_v27 }
 0x11d   : > { %1583 = vmatpush3.bf16.msra.mxu1 %v768_v3 }
 0x11e   : > { %1584 = vmatprep.subr.bf16.mxu1 %v777_v25  ;;  %v1681_v43 = vpop.f32.mrb[32].mxu0 }
 0x11f   : > { %v1119_v44 = vpop.f32.mrb[33].mxu0  ;;  %v1128_v18 = vadd.f32 %v1681_v43, %v2015_v62 }
 0x120   : > { %v1682_v45 = vpop.f32.mrb[34].mxu0  ;;  %v1120_v3 = vadd.f32 %v2015_v62, %v1119_v44 }
 0x121   : > { %1585 = vmatpush3.bf16.msra.mxu1 %v769_v1  ;;  %v1122_v46 = vpop.f32.mrb[35].mxu0  ;;  %v1131_v20 = vadd.f32 %v1682_v45, %v2015_v62 }
 0x122   : > { %v1123_v6 = vadd.f32 %v2015_v62, %v1122_v46 }
 0x124   : > { %891 = vmatmul.mubr.bf16.vlgmr.msra.gmra.mrb[0].mxu1 %v1741_v28 }
 0x125   : > { %898 = vmatprep.mubr.bf16.mxu1 %v1744_v29 }
 0x126   : > { %v1992_v47 = vpop.f32.mrb[36].mxu0 }
 0x127   : > { %v1135_v48 = vpop.f32.mrb[37].mxu0 }
 0x128   : > { %v1994_v49 = vpop.f32.mrb[38].mxu0 }
 0x129   : > { %v1138_v50 = vpop.f32.mrb[39].mxu0 }
 0x12c   : > { %899 = vmatmul.mubr.bf16.gmra.mrb[4].mxu1 %v1746_v30 }
 0x12d   : > { %906 = vmatprep.mubr.bf16.mxu1 %v1749_v31 }
 0x12e   : > { %v1996_v51 = vpop.f32.mrb[40].mxu0 }
 0x12f   : > { %v1998_v52 = vpop.f32.mrb[41].mxu0 }
 0x130   : > { %v2000_v53 = vpop.f32.mrb[42].mxu0 }
 0x131   : > { %v2002_v54 = vpop.f32.mrb[43].mxu0 }
 0x134   : > { %907 = vmatmul.mubr.bf16.gmra.mrb[8].mxu1 %v1751_v32 }
 0x135   : > { %914 = vmatprep.mubr.bf16.mxu1 %v1752_v33 }
 0x136   : > { %v2004_v55 = vpop.f32.mrb[44].mxu0 }
 0x137   : > { %v2006_v56 = vpop.f32.mrb[45].mxu0 }
 0x138   : > { %v2008_v57 = vpop.f32.mrb[46].mxu0 }
 0x139   : > { %v2010_v58 = vpop.f32.mrb[47].mxu0 }
 0x13c   : > { %915 = vmatmul.mubr.bf16.gmra.mrb[12].mxu1 %v1754_v34  ;;  %v1136_v34 = vadd.f32 %v2015_v62, %v1135_v48  ;;  %v1144_v48 = vadd.f32 %v1992_v47, %v2015_v62 }
 0x13d   : > { %922 = vmatprep.mubr.bf16.mxu1 %v1757_v35  ;;  %v1237_v35 = vpop.permute.xlu0 %1236 }
 0x144   : > { %923 = vmatmul.mubr.bf16.gmra.mrb[16].mxu1 %v1759_v36 }
 0x145   : > { %930 = vmatprep.mubr.bf16.mxu1 %v1760_v37  ;;  %v1139_v37 = vadd.f32 %v2015_v62, %v1138_v50 }
 0x14c   : > { %931 = vmatmul.mubr.bf16.gmra.mrb[20].mxu1 %v1762_v38  ;;  %v1242_v38 = vpop.permute.xlu1 %1241 }
 0x14d   : > { %938 = vmatprep.mubr.bf16.mxu1 %v1765_v39 }
 0x154   : > { %939 = vmatmul.mubr.bf16.gmra.mrb[24].mxu1 %v1767_v40 }
 0x155   : > { %946 = vmatprep.mubr.bf16.mxu1 %v1768_v41 }
 0x15c   : > { %947 = vmatmul.mubr.bf16.gmra.mrb[28].mxu1 %v1770_v42 }
 0x1f7   : > { %v1586_v60 = vpop.f32.mrb[0].mxu1 }
 0x1f8   : > { %v1587_v61 = vpop.f32.mrb[1].mxu1 }
 0x1f9   : > { %v1588_v63 = vadd.f32 %v1587_v61, %v1586_v60  ;;  %v1589_v0 = vpop.f32.mrb[2].mxu1 }
 0x1fa   : > { %v1590_v1 = vpop.f32.mrb[3].mxu1 }
 0x1fb   : > { %v1591_v2 = vadd.f32 %v1590_v1, %v1589_v0  ;;  %v1294_v5 = vmul.f32 %v1588_v63, %v1217_v59  ;;  %v1247_v63 = vpop.permute.xlu0 %1246  ;;  %v1147_v0 = vadd.f32 %v1994_v49, %v2015_v62  ;;  %v1252_v1 = vpop.permute.xlu1 %1251 }
 0x1fd   : > { %v1310_v8 = vadd.f32 %v1294_v5, %v1120_v3  ;;  %v1295_v9 = vmul.f32 %v1591_v2, %v1222_v4 }
 0x1ff   : > { %v1592_v7 = vpop.f32.mrb[4].mxu1  ;;  %v1326_v14 = vmax.f32 %v1310_v8, 0.0  ;;  %v1311_v15 = vadd.f32 %v1295_v9, %v1123_v6 }
 0x200   : > { %v1593_v10 = vpop.f32.mrb[5].mxu1 }
 0x201   : > { %v1594_v12 = vadd.f32 %v1593_v10, %v1592_v7  ;;  %v1595_v13 = vpop.f32.mrb[6].mxu1  ;;  %1342 = vst [vmem:[%s2023_s18] sm:$0xff] %v1326_v14  ;;  %v1327_v19 = vmax.f32 %v1311_v15, 0.0  ;;  %v1155_v14 = vadd.f32 %v2015_v62, %v2002_v54  ;;  %v1262_v15 = vpop.permute.xlu1 %1261 }
 0x202   : > { %v1596_v16 = vpop.f32.mrb[7].mxu1 }
 0x203   : > { %v1597_v17 = vadd.f32 %v1596_v16, %v1595_v13  ;;  %v1296_v21 = vmul.f32 %v1594_v12, %v1227_v11  ;;  %1343 = vst [vmem:[%s2023_s18 + $0x8] sm:$0xff] %v1327_v19  ;;  %v1152_v12 = vadd.f32 %v2015_v62, %v1998_v52  ;;  %v1257_v13 = vpop.permute.xlu0 %1256  ;;  %v1160_v52 = vadd.f32 %v1996_v51, %v2015_v62 }
 0x205   : > { %v1312_v23 = vadd.f32 %v1296_v21, %v1128_v18  ;;  %v1297_v25 = vmul.f32 %v1597_v17, %v1232_v22 }
 0x207   : > { %v1598_v24 = vpop.f32.mrb[8].mxu1  ;;  %v1328_v27 = vmax.f32 %v1312_v23, 0.0  ;;  %v1313_v30 = vadd.f32 %v1297_v25, %v1131_v20 }
 0x208   : > { %v1599_v26 = vpop.f32.mrb[9].mxu1 }
 0x209   : > { %v1600_v28 = vadd.f32 %v1599_v26, %v1598_v24  ;;  %v1601_v29 = vpop.f32.mrb[10].mxu1  ;;  %1344 = vst [vmem:[%s2023_s18 + $0x10] sm:$0xff] %v1328_v27  ;;  %v1329_v32 = vmax.f32 %v1313_v30, 0.0  ;;  %v1267_v27 = vpop.permute.xlu0 %1266 }
 0x20a   : > { %v1602_v31 = vpop.f32.mrb[11].mxu1 }
 0x20b   : > { %v1603_v33 = vadd.f32 %v1602_v31, %v1601_v29  ;;  %1345 = vst [vmem:[%s2023_s18 + $0x18] sm:$0xff] %v1329_v32  ;;  %v1298_v36 = vmul.f32 %v1600_v28, %v1237_v35  ;;  %v1163_v28 = vadd.f32 %v2000_v53, %v2015_v62  ;;  %v1272_v29 = vpop.permute.xlu1 %1271 }
 0x20d   : > { %v1299_v39 = vmul.f32 %v1603_v33, %v1242_v38  ;;  %v1314_v41 = vadd.f32 %v1298_v36, %v1136_v34 }
 0x20f   : > { %v1604_v40 = vpop.f32.mrb[12].mxu1  ;;  %v1330_v45 = vmax.f32 %v1314_v41, 0.0  ;;  %v1315_v46 = vadd.f32 %v1299_v39, %v1139_v37  ;;  %v1277_v41 = vpop.permute.xlu0 %1276 }
 0x210   : > { %v1605_v42 = vpop.f32.mrb[13].mxu1 }
 0x211   : > { %v1606_v43 = vadd.f32 %v1605_v42, %v1604_v40  ;;  %v1607_v44 = vpop.f32.mrb[14].mxu1  ;;  %1346 = vst [vmem:[%s2023_s18 + $0x20] sm:$0xff] %v1330_v45  ;;  %v1331_v61 = vmax.f32 %v1315_v46, 0.0  ;;  %v1168_v40 = vadd.f32 %v2015_v62, %v2006_v56  ;;  %v1171_v42 = vadd.f32 %v2015_v62, %v2010_v58 }
 0x212   : > { %v1608_v59 = vpop.f32.mrb[15].mxu1 }
 0x213   : > { %v1609_v60 = vadd.f32 %v1608_v59, %v1607_v44  ;;  %v1300_v50 = vmul.f32 %v1606_v43, %v1247_v63  ;;  %1347 = vst [vmem:[%s2023_s18 + $0x28] sm:$0xff] %v1331_v61  ;;  %v1282_v43 = vpop.permute.xlu1 %1281  ;;  %v1287_v58 = vpop.permute.xlu0 %1286 }
 0x215   : > { %v1316_v2 = vadd.f32 %v1300_v50, %v1144_v48  ;;  %v1301_v3 = vmul.f32 %v1609_v60, %v1252_v1 }
 0x217   : > { %v1610_v4 = vpop.f32.mrb[16].mxu1  ;;  %v1332_v6 = vmax.f32 %v1316_v2, 0.0  ;;  %v1317_v7 = vadd.f32 %v1301_v3, %v1147_v0  ;;  %v1176_v0 = vadd.f32 %v2004_v55, %v2015_v62  ;;  %v1292_v3 = vpop.permute.xlu1 %1291 }
 0x218   : > { %v1611_v5 = vpop.f32.mrb[17].mxu1 }
 0x219   : > { %v1612_v8 = vadd.f32 %v1611_v5, %v1610_v4  ;;  %v1613_v9 = vpop.f32.mrb[18].mxu1  ;;  %1348 = vst [vmem:[%s2023_s18 + $0x30] sm:$0xff] %v1332_v6  ;;  %v1333_v10 = vmax.f32 %v1317_v7, 0.0  ;;  %v1179_v5 = vadd.f32 %v2008_v57, %v2015_v62 }
 0x21a   : > { %v1614_v47 = vpop.f32.mrb[19].mxu1 }
 0x21b   : > { %v1615_v11 = vadd.f32 %v1614_v47, %v1613_v9  ;;  %1349 = vst [vmem:[%s2023_s18 + $0x38] sm:$0xff] %v1333_v10  ;;  %v1302_v49 = vmul.f32 %v1612_v8, %v1257_v13 }
 0x21d   : > { %v1318_v17 = vadd.f32 %v1302_v49, %v1152_v12  ;;  %v1303_v18 = vmul.f32 %v1615_v11, %v1262_v15 }
 0x21f   : > { %v1616_v16 = vpop.f32.mrb[20].mxu1  ;;  %v1334_v22 = vmax.f32 %v1318_v17, 0.0  ;;  %v1319_v23 = vadd.f32 %v1303_v18, %v1155_v14 }
 0x220   : > { %v1617_v19 = vpop.f32.mrb[21].mxu1 }
 0x221   : > { %v1618_v20 = vadd.f32 %v1617_v19, %v1616_v16  ;;  %v1619_v21 = vpop.f32.mrb[22].mxu1  ;;  %1350 = vst [vmem:[%s2023_s18 + $0x40] sm:$0xff] %v1334_v22  ;;  %v1335_v26 = vmax.f32 %v1319_v23, 0.0 }
 0x222   : > { %v1620_v24 = vpop.f32.mrb[23].mxu1 }
 0x223   : > { %v1621_v25 = vadd.f32 %v1620_v24, %v1619_v21  ;;  %v1304_v54 = vmul.f32 %v1618_v20, %v1267_v27  ;;  %1351 = vst [vmem:[%s2023_s18 + $0x48] sm:$0xff] %v1335_v26 }
 0x225   : > { %v1320_v30 = vadd.f32 %v1304_v54, %v1160_v52  ;;  %v1305_v31 = vmul.f32 %v1621_v25, %v1272_v29 }
 0x227   : > { %v1622_v32 = vpop.f32.mrb[24].mxu1  ;;  %v1336_v34 = vmax.f32 %v1320_v30, 0.0  ;;  %v1321_v35 = vadd.f32 %v1305_v31, %v1163_v28 }
 0x228   : > { %v1623_v33 = vpop.f32.mrb[25].mxu1 }
 0x229   : > { %v1624_v36 = vadd.f32 %v1623_v33, %v1622_v32  ;;  %v1625_v37 = vpop.f32.mrb[26].mxu1  ;;  %1352 = vst [vmem:[%s2023_s18 + $0x50] sm:$0xff] %v1336_v34  ;;  %v1337_v38 = vmax.f32 %v1321_v35, 0.0 }
 0x22a   : > { %v1626_v51 = vpop.f32.mrb[27].mxu1 }
 0x22b   : > { %v1627_v39 = vadd.f32 %v1626_v51, %v1625_v37  ;;  %1353 = vst [vmem:[%s2023_s18 + $0x58] sm:$0xff] %v1337_v38  ;;  %v1306_v53 = vmul.f32 %v1624_v36, %v1277_v41 }
 0x22d   : > { %v1322_v45 = vadd.f32 %v1306_v53, %v1168_v40  ;;  %v1307_v46 = vmul.f32 %v1627_v39, %v1282_v43 }
 0x22f   : > { %v1628_v44 = vpop.f32.mrb[28].mxu1  ;;  %v1338_v61 = vmax.f32 %v1322_v45, 0.0  ;;  %v1323_v63 = vadd.f32 %v1307_v46, %v1171_v42 }
 0x230   : > { %v1629_v59 = vpop.f32.mrb[29].mxu1 }
 0x231   : > { %v1630_v60 = vadd.f32 %v1629_v59, %v1628_v44  ;;  %v1631_v48 = vpop.f32.mrb[30].mxu1  ;;  %1354 = vst [vmem:[%s2023_s18 + $0x60] sm:$0xff] %v1338_v61  ;;  %v1339_v1 = vmax.f32 %v1323_v63, 0.0 }
 0x232   : > { %v1632_v50 = vpop.f32.mrb[31].mxu1 }
 0x233   : > { %v1633_v56 = vadd.f32 %v1632_v50, %v1631_v48  ;;  %v1308_v2 = vmul.f32 %v1630_v60, %v1287_v58  ;;  %1355 = vst [vmem:[%s2023_s18 + $0x68] sm:$0xff] %v1339_v1 }
 0x235   : > { %v1324_v4 = vadd.f32 %v1308_v2, %v1176_v0  ;;  %v1309_v6 = vmul.f32 %v1633_v56, %v1292_v3 }
 0x237   : > { %v1340_v7 = vmax.f32 %v1324_v4, 0.0  ;;  %v1325_v8 = vadd.f32 %v1309_v6, %v1179_v5 }
 0x239   : > { %1356 = vst [vmem:[%s2023_s18 + $0x70] sm:$0xff] %v1340_v7  ;;  %v1341_v9 = vmax.f32 %v1325_v8, 0.0 }
 0x23b   : > { %1357 = vst [vmem:[%s2023_s18 + $0x78] sm:$0xff] %v1341_v9 }
 0x23c PF: > { %s17_s26 = sadd.s32 1, %s1795_s26   ;;  %s2082_s24 = smov %s1791_s25 }
 0x23d   : > { %p14_p5 = scmp.ge.s32.totalorder %s17_s26, 4   ;;  %s2083_s25 = smov %s2085_s27 }
 0x23f   :  { %16 = sbr.rel (!%p14_p5) target bundleno = 2 (0x2), region = 95 }

// kernel: gnn_forward.3
= control target key start
LH: loop header
LB: loop body
LE: loop exit
PB: predicated region body
PF: predicated region fallthrough
CT: control target
= control target key end

     0   :  { %s2190_s24 = smov 0   ;;  %s2192_s25 = smov 0   ;;  %s2677_s0 = inlined_call_operand.vmem [shape: bf16[256,256], index: 0, kind: input, shape index: {}]   ;;  %s2678_s1 = inlined_call_operand.vmem [shape: f32[256,1], index: 1, kind: input, shape index: {}]   ;;  %s2679_s2 = inlined_call_operand.vmem [shape: bf16[256,128], index: 2, kind: input, shape index: {}, may-alias: {2,3}]   ;;  %s2680_s3 = inlined_call_operand.vmem [shape: bf16[256,128], index: 3, kind: input, shape index: {}, may-alias: {2,3}]   ;;  %s2681_s4 = inlined_call_operand.vmem [shape: bf16[128,128], index: 4, kind: input, shape index: {}]   ;;  %s2682_s5 = inlined_call_operand.vmem [shape: bf16[128,128], index: 5, kind: input, shape index: {}]   ;;  %s2683_s6 = inlined_call_operand.vmem [shape: f32[1,128], index: 6, kind: input, shape index: {}]   ;;  %s2684_s7 = inlined_call_operand.vmem [shape: f32[256,128], index: 7, kind: output, shape index: {}]  }
   0x1   :  { %s2194_s26 = smov 0  }
   0x2 LB: > { %s29_s27 = sadd.s32 1, %s2143_s25  ;;  %p1699_p0 = scmp.ge.s32.totalorder %s2147_s26, 1  ;;  %s2147_s26 = sphi %s2194_s26, %s17_s26   ;;  %s2143_s25 = sphi %s2192_s25, %s2686_s25   ;;  %s2139_s24 = sphi %s2190_s24, %s2685_s24  }
   0x3   : > { %p31_p1 = scmp.ge.s32.totalorder %s29_s27, 2  ;;  %p291_p2 = scmp.lt.s32.totalorder %s2147_s26, 3 }
   0x5   : > { %s2688_s27 = smov (%p31_p1, %s29_s27), 0  ;;  %p292_p3 = pnand %p1699_p0, %p291_p2 }
   0x6   : > { %v1997_v0 = vld [vmem:[%s2681_s4] sm:$0xff] (!%p292_p3)   ;;  %v1998_v1 = vld [vmem:[%s2681_s4 + $0x8] sm:$0xff] (!%p292_p3)   ;;  %v1999_v2 = vld [vmem:[%s2681_s4 + $0x10] sm:$0xff] (!%p292_p3)   ;;  %s1700_s29 = sshll.u32 (!%p292_p3), %s2139_s24, 4  ;;  %v2149_v49 = vmov (!%p292_p3), 0  }
   0x7   : > { %295 = sbr.rel (%p292_p3) target bundleno = 931 (0x3a3), region = 48  ;;  %1873 = vmatprep.subr.bf16.mxu0 (!%p292_p3), %v1997_v0  ;;  %v2000_v3 = vld [vmem:[%s2681_s4 + $0x18] sm:$0xff] (!%p292_p3)   ;;  %v2005_v4 = vld [vmem:[%s2679_s2] sm:$0xff] (!%p292_p3)   ;;  %v2002_v6 = vld [vmem:[%s2681_s4 + $0x28] sm:$0xff] (!%p292_p3)   ;;  %p345_p4 = scmp.lt.s32.totalorder (!%p292_p3), %s1700_s29, 31  ;;  %1995 = vset.pattern.permute.xlu0 (!%p292_p3), %v2149_v49 }
   0x8   : > { %1874 = vmatpush3.bf16.msra.mxu0 (!%p292_p3), %v1997_v0  ;;  %1889 = vmatprep.mubr.bf16.mxu0 (!%p292_p3), %v2005_v4  ;;  %v2001_v5 = vld [vmem:[%s2681_s4 + $0x20] sm:$0xff] (!%p292_p3)   ;;  %v2003_v7 = vld [vmem:[%s2681_s4 + $0x30] sm:$0xff] (!%p292_p3)   ;;  %v2004_v8 = vld [vmem:[%s2681_s4 + $0x38] sm:$0xff] (!%p292_p3)  }
   0x9   : > { %1875 = vmatprep.subr.bf16.mxu0 (!%p292_p3), %v1998_v1  ;;  %v2006_v9 = vld [vmem:[%s2679_s2 + $0x8] sm:$0xff] (!%p292_p3)   ;;  %v2007_v10 = vld [vmem:[%s2679_s2 + $0x10] sm:$0xff] (!%p292_p3)   ;;  %v2008_v11 = vld [vmem:[%s2679_s2 + $0x18] sm:$0xff] (!%p292_p3)   ;;  %1996 = vset.pattern.permute.xlu1 (!%p292_p3), %v2149_v49 }
   0xa   : > { %v2009_v12 = vld [vmem:[%s2679_s2 + $0x20] sm:$0xff] (!%p292_p3)   ;;  %v2010_v13 = vld [vmem:[%s2679_s2 + $0x28] sm:$0xff] (!%p292_p3)   ;;  %v2011_v14 = vld [vmem:[%s2679_s2 + $0x30] sm:$0xff] (!%p292_p3)  }
   0xb   : > { %v2012_v15 = vld [vmem:[%s2679_s2 + $0x38] sm:$0xff] (!%p292_p3)   ;;  %v2013_v16 = vld [vmem:[%s2679_s2 + $0x40] sm:$0xff] (!%p292_p3)   ;;  %v2014_v17 = vld [vmem:[%s2679_s2 + $0x48] sm:$0xff] (!%p292_p3)  }
   0xc   : > { %1876 = vmatpush3.bf16.msra.mxu0 (!%p292_p3), %v1998_v1  ;;  %v2015_v18 = vld [vmem:[%s2679_s2 + $0x50] sm:$0xff] (!%p292_p3)   ;;  %v2016_v19 = vld [vmem:[%s2679_s2 + $0x58] sm:$0xff] (!%p292_p3)   ;;  %v2017_v20 = vld [vmem:[%s2679_s2 + $0x60] sm:$0xff] (!%p292_p3)  }
   0xd   : > { %1877 = vmatprep.subr.bf16.mxu0 (!%p292_p3), %v1999_v2  ;;  %v2018_v21 = vld [vmem:[%s2679_s2 + $0x68] sm:$0xff] (!%p292_p3)   ;;  %v2019_v22 = vld [vmem:[%s2679_s2 + $0x70] sm:$0xff] (!%p292_p3)   ;;  %v2020_v23 = vld [vmem:[%s2679_s2 + $0x78] sm:$0xff] (!%p292_p3)  }
   0xe   : > { %v2285_v24 = vld [vmem:[%s2682_s5] sm:$0xff]   ;;  %v2292_v25 = vld [vmem:[%s2682_s5 + $0x8] sm:$0xff]   ;;  %v2299_v26 = vld [vmem:[%s2682_s5 + $0x10] sm:$0xff]   ;;  %s2690_s29 = smov (!%p345_p4, %s1700_s29), 31 }
   0xf   : > { %v2306_v27 = vld [vmem:[%s2682_s5 + $0x18] sm:$0xff]   ;;  %v2313_v28 = vld [vmem:[%s2682_s5 + $0x20] sm:$0xff]   ;;  %v2321_v29 = vld [vmem:[%s2682_s5 + $0x28] sm:$0xff]   ;;  %s2330_s11 = sshll.u32 %s2690_s29, 3  ;;  %s1706_s16 = sshll.u32 %s2690_s29, 2 }
  0x10   : > { %1878 = vmatpush3.bf16.msra.mxu0 %v1999_v2  ;;  %v2328_v30 = vld [vmem:[%s2682_s5 + $0x30] sm:$0xff]   ;;  %s2336_s13 = scalar_lea.vmem %s2677_s0, %s2330_s11  ;;  %v2344_v32 = vld [vmem:[%s2682_s5 + $0x38] sm:$0xff]   ;;  %s2349_s19 = scalar_lea.vmem %s2680_s3, %s1706_s16 }
  0x11   : > { %1879 = vmatprep.subr.bf16.mxu0 %v2000_v3  ;;  %v2028_v31 = vld [vmem:[%s2336_s13 + $0x4] ss:$8 sps:$4 sm:$0xff]   ;;  %v2043_v35 = vld [vmem:[%s2349_s19 + $0x10] sm:$0xff]   ;;  %v2044_v36 = vld [vmem:[%s2349_s19 + $0x18] sm:$0xff]   ;;  %s2379_s22 = scalar_lea.vmem %s2678_s1, %s2330_s11  ;;  %s2634_s8 = scalar_lea.vmem %s2684_s7, %s2330_s11 }
  0x12   : > { %913 = vmatprep.mubr.bf16.mxu1 %v2028_v31  ;;  %v2035_v33 = vld [vmem:[%s2349_s19] sm:$0xff]   ;;  %v2036_v34 = vld [vmem:[%s2349_s19 + $0x8] sm:$0xff]   ;;  %v1247_v51 = vld [vmem:[%s2379_s22 + $0x10] sm:$0xff] }
  0x13   : > { %v1245_v50 = vld [vmem:[%s2379_s22] sm:$0xff]  ;;  %1289 = vperm.xlu1 %1996, %v1247_v51   ;;  %v1246_v54 = vld [vmem:[%s2379_s22 + $0x8] sm:$0xff]  ;;  %v1248_v55 = vld [vmem:[%s2379_s22 + $0x18] sm:$0xff] }
  0x14   : > { %1880 = vmatpush3.bf16.msra.mxu0 %v2000_v3  ;;  %1279 = vperm.xlu0 %1995, %v1245_v50   ;;  %v1250_v60 = vld [vmem:[%s2379_s22 + $0x28] sm:$0xff]  ;;  %v1249_v61 = vld [vmem:[%s2379_s22 + $0x20] sm:$0xff]  ;;  %v1252_v0 = vld [vmem:[%s2379_s22 + $0x38] sm:$0xff] }
  0x15   : > { %1881 = vmatprep.subr.bf16.mxu0 %v2001_v5  ;;  %v1251_v1 = vld [vmem:[%s2379_s22 + $0x30] sm:$0xff]  ;;  %v2037_v49 = vld [vmem:[%s2336_s13 + $0x24] ss:$8 sps:$4 sm:$0xff]   ;;  %v2039_v50 = vld [vmem:[%s2336_s13 + $0x20] ss:$8 sps:$4 sm:$0xff]  }
  0x16   : > { %v2051_v51 = vld [vmem:[%s2336_s13 + $0x64] ss:$8 sps:$4 sm:$0xff]  }
  0x17   : > { %1294 = vperm.xlu1 %1996, %v1248_v55   ;;  %v2058_v55 = vld [vmem:[%s2349_s19 + $0x28] sm:$0xff]  }
  0x18   : > { %1882 = vmatpush3.bf16.msra.mxu0 %v2001_v5  ;;  %1284 = vperm.xlu0 %1995, %v1246_v54   ;;  %v2057_v54 = vld [vmem:[%s2349_s19 + $0x20] sm:$0xff]  }
  0x19   : > { %1883 = vmatprep.subr.bf16.mxu0 %v2002_v6 }
  0x1b   : > { %1304 = vperm.xlu1 %1996, %v1250_v60  }
  0x1c   : > { %1884 = vmatpush3.bf16.msra.mxu0 %v2002_v6  ;;  %1299 = vperm.xlu0 %1995, %v1249_v61   ;;  %v1254_v6 = vld [vmem:[%s2379_s22 + $0x48] sm:$0xff] }
  0x1d   : > { %1885 = vmatprep.subr.bf16.mxu0 %v2003_v7 }
  0x1f   : > { %1314 = vperm.xlu1 %1996, %v1252_v0  }
  0x20   : > { %1886 = vmatpush3.bf16.msra.mxu0 %v2003_v7  ;;  %1309 = vperm.xlu0 %1995, %v1251_v1   ;;  %v1253_v7 = vld [vmem:[%s2379_s22 + $0x40] sm:$0xff] }
  0x21   : > { %1887 = vmatprep.subr.bf16.mxu0 %v2004_v8 }
  0x23   : > { %1324 = vperm.xlu1 %1996, %v1254_v6  }
  0x24   : > { %1888 = vmatpush3.bf16.msra.mxu0 %v2004_v8  ;;  %1319 = vperm.xlu0 %1995, %v1253_v7  }
  0x25   : > { %1921 = vmatprep.subr.bf16.mxu0 %v2285_v24 }
  0x27   : > { %1890 = vmatmul.mubr.bf16.vlgmr.msra.gmra.mrb[0].mxu0 %v2006_v9 }
  0x28   : > { %1893 = vmatprep.mubr.bf16.mxu0 %v2007_v10  ;;  %1922 = vmatpush3.bf16.msra.mxu0 %v2285_v24  ;;  %v1256_v10 = vld [vmem:[%s2379_s22 + $0x58] sm:$0xff] }
  0x29   : > { %1923 = vmatprep.subr.bf16.mxu0 %v2292_v25  ;;  %1334 = vperm.xlu1 %1996, %v1256_v10  }
  0x2c   : > { %1924 = vmatpush3.bf16.msra.mxu0 %v2292_v25 }
  0x2d   : > { %1925 = vmatprep.subr.bf16.mxu0 %v2299_v26 }
  0x2f   : > { %1894 = vmatmul.mubr.bf16.gmra.mrb[4].mxu0 %v2008_v11  ;;  %v1255_v11 = vld [vmem:[%s2379_s22 + $0x50] sm:$0xff] }
  0x30   : > { %1897 = vmatprep.mubr.bf16.mxu0 %v2009_v12  ;;  %1926 = vmatpush3.bf16.msra.mxu0 %v2299_v26 }
  0x31   : > { %1927 = vmatprep.subr.bf16.mxu0 %v2306_v27  ;;  %1329 = vperm.xlu0 %1995, %v1255_v11  }
  0x34   : > { %1928 = vmatpush3.bf16.msra.mxu0 %v2306_v27 }
  0x35   : > { %1929 = vmatprep.subr.bf16.mxu0 %v2313_v28 }
  0x37   : > { %1898 = vmatmul.mubr.bf16.gmra.mrb[8].mxu0 %v2010_v13 }
  0x38   : > { %1901 = vmatprep.mubr.bf16.mxu0 %v2011_v14  ;;  %1930 = vmatpush3.bf16.msra.mxu0 %v2313_v28 }
  0x39   : > { %1931 = vmatprep.subr.bf16.mxu0 %v2321_v29 }
  0x3c   : > { %1932 = vmatpush3.bf16.msra.mxu0 %v2321_v29 }
  0x3d   : > { %1933 = vmatprep.subr.bf16.mxu0 %v2328_v30 }
  0x3f   : > { %1902 = vmatmul.mubr.bf16.gmra.mrb[12].mxu0 %v2012_v15 }
  0x40   : > { %1905 = vmatprep.mubr.bf16.mxu0 %v2013_v16  ;;  %1934 = vmatpush3.bf16.msra.mxu0 %v2328_v30  ;;  %v1258_v16 = vld [vmem:[%s2379_s22 + $0x68] sm:$0xff] }
  0x41   : > { %1935 = vmatprep.subr.bf16.mxu0 %v2344_v32  ;;  %1344 = vperm.xlu1 %1996, %v1258_v16  }
  0x44   : > { %1936 = vmatpush3.bf16.msra.mxu0 %v2344_v32 }
  0x47   : > { %1906 = vmatmul.mubr.bf16.gmra.mrb[16].mxu0 %v2014_v17  ;;  %v1257_v17 = vld [vmem:[%s2379_s22 + $0x60] sm:$0xff] }
  0x48   : > { %1909 = vmatprep.mubr.bf16.mxu0 %v2015_v18  ;;  %1339 = vperm.xlu0 %1995, %v1257_v17  }
  0x4f   : > { %1910 = vmatmul.mubr.bf16.gmra.mrb[20].mxu0 %v2016_v19 }
  0x50   : > { %1913 = vmatprep.mubr.bf16.mxu0 %v2017_v20  ;;  %v1260_v20 = vld [vmem:[%s2379_s22 + $0x78] sm:$0xff] }
  0x51   : > { %1354 = vperm.xlu1 %1996, %v1260_v20  }
  0x57   : > { %1914 = vmatmul.mubr.bf16.gmra.mrb[24].mxu0 %v2018_v21 }
  0x58   : > { %1917 = vmatprep.mubr.bf16.mxu0 %v2019_v22  ;;  %v1259_v22 = vld [vmem:[%s2379_s22 + $0x70] sm:$0xff] }
  0x59   : > { %1349 = vperm.xlu0 %1995, %v1259_v22  }
  0x5f   : > { %1918 = vmatmul.mubr.bf16.gmra.mrb[28].mxu0 %v2020_v23 }
  0x60   : > { %1937 = vmatprep.mubr.bf16.mxu0 %v2035_v33 }
  0x67   : > { %1938 = vmatmul.mubr.bf16.vlgmr.msra.gmra.mrb[32].mxu0 %v2036_v34 }
  0x68   : > { %1941 = vmatprep.mubr.bf16.mxu0 %v2043_v35 }
  0x6f   : > { %1942 = vmatmul.mubr.bf16.gmra.mrb[36].mxu0 %v2044_v36 }
  0x93   : > { %v1280_v1 = vpop.permute.xlu0 %1279 }
  0xfa   : > { %v2357_v37 = vpop.f32.mrb[0].mxu0 }
  0xfb   : > { %v626_v38 = vpop.f32.mrb[1].mxu0 }
  0xfc   : > { %v2359_v39 = vpop.f32.mrb[2].mxu0 }
  0xfd   : > { %v786_v40 = vpack.c.bf16 %v2359_v39, %v2357_v37  ;;  %v629_v41 = vpop.f32.mrb[3].mxu0 }
  0xfe   : > { %v785_v42 = vpack.c.bf16 %v629_v41, %v626_v38 }
 0x102   : > { %v2363_v43 = vpop.f32.mrb[4].mxu0 }
 0x103   : > { %v2365_v44 = vpop.f32.mrb[5].mxu0 }
 0x104   : > { %v2367_v45 = vpop.f32.mrb[6].mxu0 }
 0x105   : > { %v788_v46 = vpack.c.bf16 %v2367_v45, %v2363_v43  ;;  %v2371_v47 = vpop.f32.mrb[7].mxu0  ;;  %v2026_v43 = vld [vmem:[%s2336_s13] ss:$8 sps:$4 sm:$0xff]   ;;  %v2031_v45 = vld [vmem:[%s2336_s13 + $0x14] ss:$8 sps:$4 sm:$0xff]  }
 0x106   : > { %v787_v48 = vpack.c.bf16 %v2371_v47, %v2365_v44 }
 0x10a   : > { %v2383_v52 = vpop.f32.mrb[8].mxu0 }
 0x10b   : > { %v2385_v53 = vpop.f32.mrb[9].mxu0 }
 0x10c   : > { %v2389_v56 = vpop.f32.mrb[10].mxu0 }
 0x10d   : > { %v790_v57 = vpack.c.bf16 %v2389_v56, %v2383_v52  ;;  %v661_v58 = vpop.f32.mrb[11].mxu0  ;;  %v2053_v52 = vld [vmem:[%s2336_s13 + $0x60] ss:$8 sps:$4 sm:$0xff]   ;;  %v2059_v56 = vld [vmem:[%s2349_s19 + $0x30] sm:$0xff]  }
 0x10e   : > { %v789_v59 = vpack.c.bf16 %v661_v58, %v2385_v53  ;;  %v2054_v53 = vld [vmem:[%s2336_s13 + $0x74] ss:$8 sps:$4 sm:$0xff]  }
 0x112   : > { %v2396_v62 = vpop.f32.mrb[12].mxu0 }
 0x113   : > { %v674_v63 = vpop.f32.mrb[13].mxu0 }
 0x114   : > { %v1904_v2 = vpop.f32.mrb[14].mxu0 }
 0x115   : > { %v792_v3 = vpack.c.bf16 %v1904_v2, %v2396_v62  ;;  %v677_v4 = vpop.f32.mrb[15].mxu0  ;;  %v1389_v2 = vlaneseq }
 0x116   : > { %v791_v5 = vpack.c.bf16 %v677_v4, %v674_v63 }
 0x11a   : > { %v1907_v8 = vpop.f32.mrb[16].mxu0 }
 0x11b   : > { %v690_v9 = vpop.f32.mrb[17].mxu0 }
 0x11c   : > { %v1908_v12 = vpop.f32.mrb[18].mxu0 }
 0x11d   : > { %v794_v13 = vpack.c.bf16 %v1908_v12, %v1907_v8  ;;  %v693_v14 = vpop.f32.mrb[19].mxu0  ;;  %v1285_v12 = vpop.permute.xlu0 %1284 }
 0x11e   : > { %v793_v15 = vpack.c.bf16 %v693_v14, %v690_v9  ;;  %v2465_v9 = vand.u32 127, %v1389_v2 }
 0x120   : > { %1793 = vmatprep.subr.bf16.mxu1 %v793_v15  ;;  %v1290_v15 = vpop.permute.xlu1 %1289  ;;  %vm1391_vm0 = vcmp.lt.s32.totalorder %v2465_v9, 8 }
 0x121   : > { %1794 = vmatpush3.bf16.msra.mxu1 %v785_v42 }
 0x122   : > { %v1911_v18 = vpop.f32.mrb[20].mxu0  ;;  %1795 = vmatprep.subr.bf16.mxu1 %v794_v13 }
 0x123   : > { %v706_v19 = vpop.f32.mrb[21].mxu0 }
 0x124   : > { %v1912_v21 = vpop.f32.mrb[22].mxu0 }
 0x125   : > { %v796_v23 = vpack.c.bf16 %v1912_v21, %v1911_v18  ;;  %v709_v31 = vpop.f32.mrb[23].mxu0  ;;  %1796 = vmatpush3.bf16.msra.mxu1 %v786_v40 }
 0x126   : > { %v795_v33 = vpack.c.bf16 %v709_v31, %v706_v19 }
 0x128   : > { %1797 = vmatprep.subr.bf16.mxu1 %v795_v33 }
 0x129   : > { %1798 = vmatpush3.bf16.msra.mxu1 %v787_v48 }
 0x12a   : > { %v1915_v34 = vpop.f32.mrb[24].mxu0  ;;  %1799 = vmatprep.subr.bf16.mxu1 %v796_v23 }
 0x12b   : > { %v722_v35 = vpop.f32.mrb[25].mxu0 }
 0x12c   : > { %v1916_v36 = vpop.f32.mrb[26].mxu0 }
 0x12d   : > { %v798_v38 = vpack.c.bf16 %v1916_v36, %v1915_v34  ;;  %v725_v41 = vpop.f32.mrb[27].mxu0  ;;  %1800 = vmatpush3.bf16.msra.mxu1 %v788_v46  ;;  %v2033_v46 = vld [vmem:[%s2336_s13 + $0x10] ss:$8 sps:$4 sm:$0xff]   ;;  %v1295_v36 = vpop.permute.xlu1 %1294 }
 0x12e   : > { %v797_v37 = vpack.c.bf16 %v725_v41, %v722_v35 }
 0x130   : > { %1801 = vmatprep.subr.bf16.mxu1 %v797_v37 }
 0x131   : > { %1802 = vmatpush3.bf16.msra.mxu1 %v789_v59 }
 0x132   : > { %v1919_v39 = vpop.f32.mrb[28].mxu0  ;;  %1803 = vmatprep.subr.bf16.mxu1 %v798_v38 }
 0x133   : > { %v738_v40 = vpop.f32.mrb[29].mxu0 }
 0x134   : > { %v1920_v42 = vpop.f32.mrb[30].mxu0 }
 0x135   : > { %v800_v44 = vpack.c.bf16 %v1920_v42, %v1919_v39  ;;  %v741_v47 = vpop.f32.mrb[31].mxu0  ;;  %1804 = vmatpush3.bf16.msra.mxu1 %v790_v57 }
 0x136   : > { %v799_v48 = vpack.c.bf16 %v741_v47, %v738_v40 }
 0x138   : > { %1805 = vmatprep.subr.bf16.mxu1 %v799_v48 }
 0x139   : > { %1806 = vmatpush3.bf16.msra.mxu1 %v791_v5  ;;  %v2463_v5 = vld [vmem:[%s2683_s6] ss:$0 sm:$0xff] }
 0x13a   : > { %1807 = vmatprep.subr.bf16.mxu1 %v800_v44  ;;  %v1939_v57 = vpop.f32.mrb[32].mxu0 }
 0x13b   : > { %v1182_v58 = vpop.f32.mrb[33].mxu0  ;;  %v1191_v34 = vadd.f32 %v1939_v57, %v2463_v5 }
 0x13c   : > { %v1940_v59 = vpop.f32.mrb[34].mxu0  ;;  %v1183_v11 = vadd.f32 %v2463_v5, %v1182_v58 }
 0x13d   : > { %1808 = vmatpush3.bf16.msra.mxu1 %v792_v3  ;;  %v1185_v60 = vpop.f32.mrb[35].mxu0  ;;  %v1194_v38 = vadd.f32 %v1940_v59, %v2463_v5 }
 0x13e   : > { %1953 = vmatprep.subr.bf16.mxu1 %v2285_v24  ;;  %v1186_v14 = vadd.f32 %v2463_v5, %v1185_v60 }
 0x140   : > { %914 = vmatmul.mubr.bf16.vlgmr.msra.gmra.mrb[0].mxu1 %v2026_v43 }
 0x141   : > { %1961 = vmatpush3.bf16.msra.mxu1 %v2285_v24  ;;  %921 = vmatprep.mubr.bf16.mxu1 %v2031_v45  ;;  %v2040_v24 = vld [vmem:[%s2336_s13 + $0x34] ss:$8 sps:$4 sm:$0xff]  }
 0x142   : > { %1954 = vmatprep.subr.bf16.mxu1 %v2292_v25  ;;  %v2456_v61 = vpop.f32.mrb[36].mxu0 }
 0x143   : > { %v1198_v62 = vpop.f32.mrb[37].mxu0  ;;  %v1207_v58 = vadd.f32 %v2456_v61, %v2463_v5 }
 0x144   : > { %v2458_v63 = vpop.f32.mrb[38].mxu0 }
 0x145   : > { %1962 = vmatpush3.bf16.msra.mxu1 %v2292_v25  ;;  %v2042_v25 = vld [vmem:[%s2336_s13 + $0x30] ss:$8 sps:$4 sm:$0xff]   ;;  %v1201_v0 = vpop.f32.mrb[39].mxu0 }
 0x146   : > { %1955 = vmatprep.subr.bf16.mxu1 %v2299_v26 }
 0x148   : > { %922 = vmatmul.mubr.bf16.gmra.mrb[4].mxu1 %v2033_v46  ;;  %v1300_v46 = vpop.permute.xlu0 %1299 }
 0x149   : > { %929 = vmatprep.mubr.bf16.mxu1 %v2037_v49  ;;  %1963 = vmatpush3.bf16.msra.mxu1 %v2299_v26  ;;  %v2045_v26 = vld [vmem:[%s2336_s13 + $0x44] ss:$8 sps:$4 sm:$0xff]  }
 0x14a   : > { %1956 = vmatprep.subr.bf16.mxu1 %v2306_v27 }
 0x14d   : > { %1964 = vmatpush3.bf16.msra.mxu1 %v2306_v27  ;;  %v2047_v27 = vld [vmem:[%s2336_s13 + $0x40] ss:$8 sps:$4 sm:$0xff]  }
 0x14e   : > { %1957 = vmatprep.subr.bf16.mxu1 %v2313_v28 }
 0x150   : > { %930 = vmatmul.mubr.bf16.gmra.mrb[8].mxu1 %v2039_v50  ;;  %v1199_v50 = vadd.f32 %v2463_v5, %v1198_v62  ;;  %v1210_v62 = vadd.f32 %v2458_v63, %v2463_v5 }
 0x151   : > { %937 = vmatprep.mubr.bf16.mxu1 %v2040_v24  ;;  %1965 = vmatpush3.bf16.msra.mxu1 %v2313_v28  ;;  %v2048_v28 = vld [vmem:[%s2336_s13 + $0x54] ss:$8 sps:$4 sm:$0xff]   ;;  %v1305_v24 = vpop.permute.xlu1 %1304 }
 0x152   : > { %1958 = vmatprep.subr.bf16.mxu1 %v2321_v29 }
 0x155   : > { %1966 = vmatpush3.bf16.msra.mxu1 %v2321_v29  ;;  %v2050_v29 = vld [vmem:[%s2336_s13 + $0x50] ss:$8 sps:$4 sm:$0xff]   ;;  %v1315_v60 = vpop.permute.xlu1 %1314 }
 0x156   : > { %1959 = vmatprep.subr.bf16.mxu1 %v2328_v30 }
 0x158   : > { %938 = vmatmul.mubr.bf16.gmra.mrb[12].mxu1 %v2042_v25 }
 0x159   : > { %945 = vmatprep.mubr.bf16.mxu1 %v2045_v26  ;;  %1967 = vmatpush3.bf16.msra.mxu1 %v2328_v30  ;;  %v2056_v30 = vld [vmem:[%s2336_s13 + $0x70] ss:$8 sps:$4 sm:$0xff]   ;;  %v1202_v26 = vadd.f32 %v2463_v5, %v1201_v0 }
 0x15a   : > { %1960 = vmatprep.subr.bf16.mxu1 %v2344_v32 }
 0x15d   : > { %1968 = vmatpush3.bf16.msra.mxu1 %v2344_v32  ;;  %v2060_v32 = vld [vmem:[%s2349_s19 + $0x38] sm:$0xff]  }
 0x160   : > { %946 = vmatmul.mubr.bf16.gmra.mrb[16].mxu1 %v2047_v27 }
 0x161   : > { %953 = vmatprep.mubr.bf16.mxu1 %v2048_v28 }
 0x168   : > { %954 = vmatmul.mubr.bf16.gmra.mrb[20].mxu1 %v2050_v29 }
 0x169   : > { %961 = vmatprep.mubr.bf16.mxu1 %v2051_v51 }
 0x170   : > { %962 = vmatmul.mubr.bf16.gmra.mrb[24].mxu1 %v2053_v52 }
 0x171   : > { %969 = vmatprep.mubr.bf16.mxu1 %v2054_v53 }
 0x178   : > { %970 = vmatmul.mubr.bf16.gmra.mrb[28].mxu1 %v2056_v30 }
 0x179   : > { %1945 = vmatprep.mubr.bf16.mxu1 %v2057_v54 }
 0x180   : > { %1946 = vmatmul.mubr.bf16.vlgmr.msra.gmra.mrb[32].mxu1 %v2058_v55 }
 0x181   : > { %1949 = vmatprep.mubr.bf16.mxu1 %v2059_v56 }
 0x188   : > { %1950 = vmatmul.mubr.bf16.gmra.mrb[36].mxu1 %v2060_v32  ;;  %v1310_v32 = vpop.permute.xlu0 %1309 }
 0x213   : > { %v1809_v3 = vpop.f32.mrb[0].mxu1 }
 0x214   : > { %v1810_v4 = vpop.f32.mrb[1].mxu1 }
 0x215   : > { %v1811_v6 = vadd.f32 %v1810_v4, %v1809_v3  ;;  %v1812_v7 = vpop.f32.mrb[2].mxu1 }
 0x216   : > { %v1813_v8 = vpop.f32.mrb[3].mxu1 }
 0x217   : > { %v1814_v10 = vadd.f32 %v1813_v8, %v1812_v7  ;;  %v1357_v13 = vmul.f32 %v1811_v6, %v1280_v1 }
 0x219   : > { %v1358_v17 = vmul.f32 %v1814_v10, %v1285_v12  ;;  %v1373_v18 = vadd.f32 %v1357_v13, %v1183_v11 }
 0x21b   : > { %v1815_v16 = vpop.f32.mrb[4].mxu1  ;;  %v2472_v22 = vsel %vm1391_vm0, %v1373_v18, -inf  ;;  %v1374_v23 = vadd.f32 %v1358_v17, %v1186_v14 }
 0x21c   : > { %v1816_v19 = vpop.f32.mrb[5].mxu1  ;;  %1408 = vmax.xlane.f32.xlu0 %v2472_v22 }
 0x21d   : > { %v1817_v20 = vadd.f32 %v1816_v19, %v1815_v16  ;;  %v1818_v21 = vpop.f32.mrb[6].mxu1  ;;  %v2478_v35 = vsel %vm1391_vm0, %v1374_v23, -inf }
 0x21e   : > { %v1819_v31 = vpop.f32.mrb[7].mxu1  ;;  %1410 = vmax.xlane.f32.xlu1 %v2478_v35 }
 0x21f   : > { %v1820_v33 = vadd.f32 %v1819_v31, %v1818_v21  ;;  %v1359_v41 = vmul.f32 %v1817_v20, %v1290_v15 }
 0x221   : > { %v1360_v39 = vmul.f32 %v1820_v33, %v1295_v36  ;;  %v1375_v40 = vadd.f32 %v1359_v41, %v1191_v34  ;;  %v1320_v33 = vpop.permute.xlu0 %1319  ;;  %v1325_v34 = vpop.permute.xlu1 %1324 }
 0x223   : > { %v1821_v37 = vpop.f32.mrb[8].mxu1  ;;  %v2484_v48 = vsel %vm1391_vm0, %v1375_v40, -inf  ;;  %v1376_v43 = vadd.f32 %v1360_v39, %v1194_v38 }
 0x224   : > { %v1822_v42 = vpop.f32.mrb[9].mxu1  ;;  %1412 = vmax.xlane.f32.xlu0 %v2484_v48 }
 0x225   : > { %v1823_v44 = vadd.f32 %v1822_v42, %v1821_v37  ;;  %v1824_v47 = vpop.f32.mrb[10].mxu1  ;;  %v2491_v27 = vsel %vm1391_vm0, %v1376_v43, -inf  ;;  %v1330_v40 = vpop.permute.xlu0 %1329 }
 0x226   : > { %v1825_v45 = vpop.f32.mrb[11].mxu1 }
 0x227   : > { %v1826_v49 = vadd.f32 %v1825_v45, %v1824_v47  ;;  %v1361_v25 = vmul.f32 %v1823_v44, %v1300_v46  ;;  %v1335_v44 = vpop.permute.xlu1 %1334 }
 0x228   : > { %1414 = vmax.xlane.f32.xlu0 %v2491_v27 }
 0x229   : > { %v1362_v29 = vmul.f32 %v1826_v49, %v1305_v24  ;;  %v1377_v51 = vadd.f32 %v1361_v25, %v1199_v50  ;;  %v1340_v50 = vpop.permute.xlu0 %1339 }
 0x22b   : > { %v1827_v28 = vpop.f32.mrb[12].mxu1  ;;  %v2496_v54 = vsel %vm1391_vm0, %v1377_v51, -inf  ;;  %v1378_v55 = vadd.f32 %v1362_v29, %v1202_v26 }
 0x22c   : > { %v1828_v52 = vpop.f32.mrb[13].mxu1  ;;  %1416 = vmax.xlane.f32.xlu1 %v2496_v54 }
 0x22d   : > { %v1829_v53 = vadd.f32 %v1828_v52, %v1827_v28  ;;  %v1830_v30 = vpop.f32.mrb[14].mxu1  ;;  %v2503_v59 = vsel %vm1391_vm0, %v1378_v55, -inf }
 0x22e   : > { %v1831_v56 = vpop.f32.mrb[15].mxu1  ;;  %1418 = vmax.xlane.f32.xlu0 %v2503_v59 }
 0x22f   : > { %v1832_v57 = vadd.f32 %v1831_v56, %v1830_v30  ;;  %v1363_v0 = vmul.f32 %v1829_v53, %v1310_v32  ;;  %v1345_v53 = vpop.permute.xlu1 %1344 }
 0x231   : > { %v1364_v1 = vmul.f32 %v1832_v57, %v1315_v60  ;;  %v1379_v3 = vadd.f32 %v1363_v0, %v1207_v58  ;;  %v1350_v60 = vpop.permute.xlu0 %1349 }
 0x233   : > { %v1833_v2 = vpop.f32.mrb[16].mxu1  ;;  %v2510_v61 = vsel %vm1391_vm0, %v1379_v3, -inf  ;;  %v1380_v8 = vadd.f32 %v1364_v1, %v1210_v62 }
 0x234   : > { %v1834_v4 = vpop.f32.mrb[17].mxu1  ;;  %1420 = vmax.xlane.f32.xlu1 %v2510_v61 }
 0x235   : > { %v1835_v6 = vadd.f32 %v1834_v4, %v1833_v2  ;;  %v1836_v7 = vpop.f32.mrb[18].mxu1  ;;  %v2515_v12 = vsel %vm1391_vm0, %v1380_v8, -inf  ;;  %v1355_v4 = vpop.permute.xlu1 %1354 }
 0x236   : > { %v1837_v10 = vpop.f32.mrb[19].mxu1  ;;  %1422 = vmax.xlane.f32.xlu0 %v2515_v12 }
 0x237   : > { %v1838_v11 = vadd.f32 %v1837_v10, %v1836_v7  ;;  %v1365_v49 = vmul.f32 %v1835_v6, %v1320_v33 }
 0x239   : > { %v1366_v52 = vmul.f32 %v1838_v11, %v1325_v34 }
 0x23b   : > { %v1839_v63 = vpop.f32.mrb[20].mxu1 }
 0x23c   : > { %v1840_v13 = vpop.f32.mrb[21].mxu1 }
 0x23d   : > { %v1841_v14 = vadd.f32 %v1840_v13, %v1839_v63  ;;  %v1842_v15 = vpop.f32.mrb[22].mxu1 }
 0x23e   : > { %v1843_v16 = vpop.f32.mrb[23].mxu1 }
 0x23f   : > { %v1844_v17 = vadd.f32 %v1843_v16, %v1842_v15  ;;  %v1367_v46 = vmul.f32 %v1841_v14, %v1330_v40 }
 0x241   : > { %v1368_v51 = vmul.f32 %v1844_v17, %v1335_v44 }
 0x243   : > { %v1845_v18 = vpop.f32.mrb[24].mxu1 }
 0x244   : > { %v1846_v19 = vpop.f32.mrb[25].mxu1 }
 0x245   : > { %v1847_v20 = vadd.f32 %v1846_v19, %v1845_v18  ;;  %v1848_v21 = vpop.f32.mrb[26].mxu1 }
 0x246   : > { %v1849_v23 = vpop.f32.mrb[27].mxu1 }
 0x247   : > { %v1850_v31 = vadd.f32 %v1849_v23, %v1848_v21  ;;  %v1369_v8 = vmul.f32 %v1847_v20, %v1340_v50 }
 0x249   : > { %v1370_v17 = vmul.f32 %v1850_v31, %v1345_v53 }
 0x24b   : > { %v1851_v36 = vpop.f32.mrb[28].mxu1 }
 0x24c   : > { %v1852_v38 = vpop.f32.mrb[29].mxu1 }
 0x24d   : > { %v1853_v41 = vadd.f32 %v1852_v38, %v1851_v36  ;;  %v1854_v37 = vpop.f32.mrb[30].mxu1 }
 0x24e   : > { %v1855_v39 = vpop.f32.mrb[31].mxu1 }
 0x24f   : > { %v1856_v42 = vadd.f32 %v1855_v39, %v1854_v37  ;;  %v1371_v3 = vmul.f32 %v1853_v41, %v1350_v60 }
 0x251   : > { %v1372_v14 = vmul.f32 %v1856_v42, %v1355_v4 }
 0x253   : > { %v1947_v47 = vpop.f32.mrb[32].mxu1 }
 0x254   : > { %v1223_v43 = vadd.f32 %v1947_v47, %v2463_v5  ;;  %v1214_v45 = vpop.f32.mrb[33].mxu1 }
 0x255   : > { %v1215_v24 = vadd.f32 %v2463_v5, %v1214_v45  ;;  %v1948_v25 = vpop.f32.mrb[34].mxu1 }
 0x256   : > { %v1226_v26 = vadd.f32 %v1948_v25, %v2463_v5  ;;  %v1217_v28 = vpop.f32.mrb[35].mxu1  ;;  %v1383_v29 = vadd.f32 %v1367_v46, %v1223_v43 }
 0x257   : > { %v1218_v30 = vadd.f32 %v2463_v5, %v1217_v28  ;;  %v1381_v55 = vadd.f32 %v1365_v49, %v1215_v24 }
 0x258   : > { %v2524_v56 = vsel %vm1391_vm0, %v1383_v29, -inf  ;;  %v1384_v32 = vadd.f32 %v1368_v51, %v1226_v26 }
 0x259   : > { %1428 = vmax.xlane.f32.xlu1 %v2524_v56  ;;  %v1382_v57 = vadd.f32 %v1366_v52, %v1218_v30  ;;  %v2535_v2 = vsel %vm1391_vm0, %v1381_v55, -inf }
 0x25a   : > { %v2529_v58 = vsel %vm1391_vm0, %v1384_v32, -inf }
 0x25b   : > { %v1951_v62 = vpop.f32.mrb[36].mxu1  ;;  %1430 = vmax.xlane.f32.xlu0 %v2529_v58  ;;  %v2542_v63 = vsel %vm1391_vm0, %v1382_v57, -inf }
 0x25c   : > { %v1239_v0 = vadd.f32 %v1951_v62, %v2463_v5  ;;  %v1230_v1 = vpop.f32.mrb[37].mxu1 }
 0x25d   : > { %v1231_v6 = vadd.f32 %v2463_v5, %v1230_v1  ;;  %v1952_v7 = vpop.f32.mrb[38].mxu1  ;;  %1424 = vmax.xlane.f32.xlu1 %v2535_v2 }
 0x25e   : > { %v1242_v10 = vadd.f32 %v1952_v7, %v2463_v5  ;;  %v1233_v11 = vpop.f32.mrb[39].mxu1  ;;  %v1387_v13 = vadd.f32 %v1371_v3, %v1239_v0 }
 0x25f   : > { %v1234_v15 = vadd.f32 %v2463_v5, %v1233_v11  ;;  %1426 = vmax.xlane.f32.xlu0 %v2542_v63  ;;  %v1385_v16 = vadd.f32 %v1369_v8, %v1231_v6 }
 0x260   : > { %v1388_v18 = vadd.f32 %v1372_v14, %v1242_v10  ;;  %v2558_v5 = vsel %vm1391_vm0, %v1387_v13, -inf }
 0x261   : > { %v2548_v19 = vsel %vm1391_vm0, %v1385_v16, -inf  ;;  %v1386_v20 = vadd.f32 %v1370_v17, %v1234_v15 }
 0x262   : > { %1432 = vmax.xlane.f32.xlu1 %v2548_v19  ;;  %v2563_v23 = vsel %vm1391_vm0, %v1388_v18, -inf }
 0x263   : > { %v2553_v21 = vsel %vm1391_vm0, %v1386_v20, -inf }
 0x264   : > { %1434 = vmax.xlane.f32.xlu0 %v2553_v21 }
 0x266   : > { %1436 = vmax.xlane.f32.xlu1 %v2558_v5 }
 0x268   : > { %1438 = vmax.xlane.f32.xlu0 %v2563_v23 }
 0x2a9   : > { %v1409_v31 = vpop.xlane.xlu0 %1408 }
 0x2aa   : > { %v2567_v33 = vsub.f32 %v2472_v22, %v1409_v31 }
 0x2ab   : > { %v1411_v34 = vpop.xlane.xlu1 %1410 }
 0x2ac   : > { %v1456_v36 = vmul.f32 1.442695, %v2567_v33  ;;  %v2571_v38 = vsub.f32 %v2478_v35, %v1411_v34 }
 0x2ae   : > { %2061 = vpow2.f32 %v1456_v36  ;;  %v1458_v41 = vmul.f32 1.442695, %v2571_v38 }
 0x2b0   : > { %2063 = vpow2.f32 %v1458_v41 }
 0x2b1   : > { %v1413_v37 = vpop.xlane.xlu0 %1412 }
 0x2b2   : > { %v2575_v9 = vsub.f32 %v2484_v48, %v1413_v37 }
 0x2b4   : > { %v1460_v39 = vmul.f32 1.442695, %v2575_v9 }
 0x2b5   : > { %v1415_v40 = vpop.xlane.xlu0 %1414 }
 0x2b6   : > { %2065 = vpow2.f32 %v1460_v39  ;;  %v2579_v22 = vsub.f32 %v2491_v27, %v1415_v40 }
 0x2b8   : > { %v2062_v42 = vpop.eup %2061  ;;  %v1462_v44 = vmul.f32 1.442695, %v2579_v22 }
 0x2b9   : > { %v1417_v35 = vpop.xlane.xlu1 %1416  ;;  %1488 = vadd.xlane.f32.xlu1 %v2062_v42 }
 0x2ba   : > { %v2064_v47 = vpop.eup %2063  ;;  %2067 = vpow2.f32 %v1462_v44  ;;  %v2583_v43 = vsub.f32 %v2496_v54, %v1417_v35 }
 0x2bb   : > { %1490 = vadd.xlane.f32.xlu0 %v2064_v47  ;;  %v1419_v48 = vpop.xlane.xlu0 %1418 }
 0x2bc   : > { %v1464_v45 = vmul.f32 1.442695, %v2583_v43  ;;  %v2587_v46 = vsub.f32 %v2503_v59, %v1419_v48 }
 0x2be   : > { %2069 = vpow2.f32 %v1464_v45  ;;  %v1466_v27 = vmul.f32 1.442695, %v2587_v46 }
 0x2c0   : > { %v2066_v49 = vpop.eup %2065  ;;  %2071 = vpow2.f32 %v1466_v27 }
 0x2c1   : > { %v1421_v50 = vpop.xlane.xlu1 %1420  ;;  %1492 = vadd.xlane.f32.xlu1 %v2066_v49 }
 0x2c2   : > { %v2591_v24 = vsub.f32 %v2510_v61, %v1421_v50 }
 0x2c3   : > { %v1423_v25 = vpop.xlane.xlu0 %1422 }
 0x2c4   : > { %v2068_v54 = vpop.eup %2067  ;;  %v1468_v26 = vmul.f32 1.442695, %v2591_v24  ;;  %v2595_v28 = vsub.f32 %v2515_v12, %v1423_v25 }
 0x2c5   : > { %1494 = vadd.xlane.f32.xlu0 %v2068_v54 }
 0x2c6   : > { %2073 = vpow2.f32 %v1468_v26  ;;  %v1470_v59 = vmul.f32 1.442695, %v2595_v28 }
 0x2c8   : > { %v2070_v29 = vpop.eup %2069  ;;  %2075 = vpow2.f32 %v1470_v59 }
 0x2c9   : > { %1496 = vadd.xlane.f32.xlu1 %v2070_v29 }
 0x2ca   : > { %v2072_v51 = vpop.eup %2071 }
 0x2cb   : > { %1498 = vadd.xlane.f32.xlu0 %v2072_v51 }
 0x2d0   : > { %v2074_v52 = vpop.eup %2073 }
 0x2d1   : > { %1500 = vadd.xlane.f32.xlu1 %v2074_v52 }
 0x2d2   : > { %v2076_v61 = vpop.eup %2075 }
 0x2d3   : > { %1502 = vadd.xlane.f32.xlu0 %v2076_v61 }
 0x2e6   : > { %v1429_v53 = vpop.xlane.xlu1 %1428 }
 0x2e7   : > { %v2599_v30 = vsub.f32 %v2524_v56, %v1429_v53 }
 0x2e8   : > { %v1431_v55 = vpop.xlane.xlu0 %1430 }
 0x2e9   : > { %v1476_v12 = vmul.f32 1.442695, %v2599_v30  ;;  %v2603_v32 = vsub.f32 %v2529_v58, %v1431_v55 }
 0x2ea   : > { %v1425_v57 = vpop.xlane.xlu1 %1424 }
 0x2eb   : > { %2077 = vpow2.f32 %v1476_v12  ;;  %v1478_v60 = vmul.f32 1.442695, %v2603_v32  ;;  %v2607_v62 = vsub.f32 %v2535_v2, %v1425_v57 }
 0x2ec   : > { %v1427_v0 = vpop.xlane.xlu0 %1426 }
 0x2ed   : > { %2079 = vpow2.f32 %v1478_v60  ;;  %v1472_v1 = vmul.f32 1.442695, %v2607_v62  ;;  %v2611_v56 = vsub.f32 %v2542_v63, %v1427_v0 }
 0x2ef   : > { %2081 = vpow2.f32 %v1472_v1  ;;  %v1474_v3 = vmul.f32 1.442695, %v2611_v56  ;;  %v1433_v4 = vpop.xlane.xlu1 %1432 }
 0x2f0   : > { %v2615_v58 = vsub.f32 %v2548_v19, %v1433_v4 }
 0x2f1   : > { %2083 = vpow2.f32 %v1474_v3  ;;  %v1435_v6 = vpop.xlane.xlu0 %1434 }
 0x2f2   : > { %v1480_v7 = vmul.f32 1.442695, %v2615_v58  ;;  %v2619_v2 = vsub.f32 %v2553_v21, %v1435_v6 }
 0x2f3   : > { %v1437_v8 = vpop.xlane.xlu1 %1436 }
 0x2f4   : > { %2085 = vpow2.f32 %v1480_v7  ;;  %v1482_v10 = vmul.f32 1.442695, %v2619_v2  ;;  %v2623_v11 = vsub.f32 %v2558_v5, %v1437_v8 }
 0x2f5   : > { %v2078_v63 = vpop.eup %2077  ;;  %v1439_v13 = vpop.xlane.xlu0 %1438 }
 0x2f6   : > { %2087 = vpow2.f32 %v1482_v10  ;;  %v1484_v14 = vmul.f32 1.442695, %v2623_v11  ;;  %v2627_v15 = vsub.f32 %v2563_v23, %v1439_v13  ;;  %1508 = vadd.xlane.f32.xlu1 %v2078_v63 }
 0x2f7   : > { %v2080_v16 = vpop.eup %2079 }
 0x2f8   : > { %2089 = vpow2.f32 %v1484_v14  ;;  %v1486_v17 = vmul.f32 1.442695, %v2627_v15  ;;  %1510 = vadd.xlane.f32.xlu0 %v2080_v16 }
 0x2f9   : > { %v2082_v18 = vpop.eup %2081 }
 0x2fa   : > { %2091 = vpow2.f32 %v1486_v17  ;;  %1504 = vadd.xlane.f32.xlu1 %v2082_v18 }
 0x2fb   : > { %v2084_v19 = vpop.eup %2083 }
 0x2fc   : > { %1506 = vadd.xlane.f32.xlu0 %v2084_v19 }
 0x2fe   : > { %v2086_v20 = vpop.eup %2085 }
 0x2ff   : > { %1512 = vadd.xlane.f32.xlu1 %v2086_v20 }
 0x300   : > { %v2088_v21 = vpop.eup %2087 }
 0x301   : > { %1514 = vadd.xlane.f32.xlu0 %v2088_v21 }
 0x302   : > { %v2090_v5 = vpop.eup %2089 }
 0x303   : > { %1516 = vadd.xlane.f32.xlu1 %v2090_v5 }
 0x304   : > { %v2092_v23 = vpop.eup %2091 }
 0x305   : > { %1518 = vadd.xlane.f32.xlu0 %v2092_v23 }
 0x346   : > { %v1489_v31 = vpop.xlane.xlu1 %1488 }
 0x347   : > { %2093 = vlog2.f32 %v1489_v31 }
 0x348   : > { %v1491_v34 = vpop.xlane.xlu0 %1490 }
 0x349   : > { %2095 = vlog2.f32 %v1491_v34 }
 0x34e   : > { %v1493_v36 = vpop.xlane.xlu1 %1492 }
 0x34f   : > { %2097 = vlog2.f32 %v1493_v36 }
 0x351   : > { %v2094_v41 = vpop.eup %2093 }
 0x352   : > { %v1521_v37 = vmul.f32 0.6931472, %v2094_v41  ;;  %v1495_v39 = vpop.xlane.xlu0 %1494 }
 0x353   : > { %v2096_v40 = vpop.eup %2095  ;;  %2099 = vlog2.f32 %v1495_v39 }
 0x354   : > { %v1552_v42 = vsub.f32 %v2567_v33, %v1521_v37  ;;  %v1523_v44 = vmul.f32 0.6931472, %v2096_v40 }
 0x356   : > { %1568 = vst [vmem:[%s2634_s8] sm:$0xff] %v1552_v42  ;;  %v1553_v35 = vsub.f32 %v2571_v38, %v1523_v44  ;;  %v1497_v47 = vpop.xlane.xlu1 %1496 }
 0x357   : > { %2101 = vlog2.f32 %v1497_v47 }
 0x358   : > { %1569 = vst [vmem:[%s2634_s8 + $0x8] sm:$0xff] %v1553_v35  ;;  %v1499_v48 = vpop.xlane.xlu0 %1498 }
 0x359   : > { %v2098_v45 = vpop.eup %2097  ;;  %2103 = vlog2.f32 %v1499_v48 }
 0x35a   : > { %v1525_v27 = vmul.f32 0.6931472, %v2098_v45 }
 0x35c   : > { %v1554_v49 = vsub.f32 %v2575_v9, %v1525_v27 }
 0x35d   : > { %v2100_v50 = vpop.eup %2099 }
 0x35e   : > { %1570 = vst [vmem:[%s2634_s8 + $0x10] sm:$0xff] %v1554_v49  ;;  %v1527_v25 = vmul.f32 0.6931472, %v2100_v50  ;;  %v1501_v33 = vpop.xlane.xlu1 %1500 }
 0x35f   : > { %2105 = vlog2.f32 %v1501_v33 }
 0x360   : > { %v1555_v54 = vsub.f32 %v2579_v22, %v1527_v25  ;;  %v1503_v38 = vpop.xlane.xlu0 %1502 }
 0x361   : > { %v2102_v26 = vpop.eup %2101  ;;  %2107 = vlog2.f32 %v1503_v38 }
 0x362   : > { %1571 = vst [vmem:[%s2634_s8 + $0x18] sm:$0xff] %v1555_v54  ;;  %v1529_v59 = vmul.f32 0.6931472, %v2102_v26 }
 0x363   : > { %v2104_v29 = vpop.eup %2103 }
 0x364   : > { %v1556_v51 = vsub.f32 %v2583_v43, %v1529_v59  ;;  %v1531_v52 = vmul.f32 0.6931472, %v2104_v29 }
 0x366   : > { %1572 = vst [vmem:[%s2634_s8 + $0x20] sm:$0xff] %v1556_v51  ;;  %v1557_v9 = vsub.f32 %v2587_v46, %v1531_v52 }
 0x368   : > { %1573 = vst [vmem:[%s2634_s8 + $0x28] sm:$0xff] %v1557_v9 }
 0x369   : > { %v2106_v61 = vpop.eup %2105 }
 0x36a   : > { %v1533_v53 = vmul.f32 0.6931472, %v2106_v61 }
 0x36b   : > { %v2108_v55 = vpop.eup %2107 }
 0x36c   : > { %v1558_v22 = vsub.f32 %v2591_v24, %v1533_v53  ;;  %v1535_v12 = vmul.f32 0.6931472, %v2108_v55 }
 0x36e   : > { %1574 = vst [vmem:[%s2634_s8 + $0x30] sm:$0xff] %v1558_v22  ;;  %v1559_v57 = vsub.f32 %v2595_v28, %v1535_v12 }
 0x370   : > { %1575 = vst [vmem:[%s2634_s8 + $0x38] sm:$0xff] %v1559_v57 }
 0x383   : > { %v1509_v60 = vpop.xlane.xlu1 %1508 }
 0x384   : > { %2109 = vlog2.f32 %v1509_v60 }
 0x385   : > { %v1511_v0 = vpop.xlane.xlu0 %1510 }
 0x386   : > { %2111 = vlog2.f32 %v1511_v0 }
 0x387   : > { %v1505_v43 = vpop.xlane.xlu1 %1504 }
 0x388   : > { %2113 = vlog2.f32 %v1505_v43 }
 0x389   : > { %v1507_v1 = vpop.xlane.xlu0 %1506 }
 0x38a   : > { %2115 = vlog2.f32 %v1507_v1 }
 0x38c   : > { %v1513_v46 = vpop.xlane.xlu1 %1512 }
 0x38d   : > { %2117 = vlog2.f32 %v1513_v46 }
 0x38e   : > { %v2110_v3 = vpop.eup %2109  ;;  %v1515_v4 = vpop.xlane.xlu0 %1514 }
 0x38f   : > { %v1541_v24 = vmul.f32 0.6931472, %v2110_v3  ;;  %2119 = vlog2.f32 %v1515_v4 }
 0x390   : > { %v2112_v6 = vpop.eup %2111  ;;  %v1517_v28 = vpop.xlane.xlu1 %1516 }
 0x391   : > { %v1562_v7 = vsub.f32 %v2599_v30, %v1541_v24  ;;  %v1543_v8 = vmul.f32 0.6931472, %v2112_v6  ;;  %2121 = vlog2.f32 %v1517_v28 }
 0x392   : > { %v2114_v10 = vpop.eup %2113  ;;  %v1519_v63 = vpop.xlane.xlu0 %1518 }
 0x393   : > { %1578 = vst [vmem:[%s2634_s8 + $0x50] sm:$0xff] %v1562_v7  ;;  %v1563_v13 = vsub.f32 %v2603_v32, %v1543_v8  ;;  %v1537_v14 = vmul.f32 0.6931472, %v2114_v10  ;;  %2123 = vlog2.f32 %v1519_v63 }
 0x394   : > { %v2116_v16 = vpop.eup %2115 }
 0x395   : > { %1579 = vst [vmem:[%s2634_s8 + $0x58] sm:$0xff] %v1563_v13  ;;  %v1560_v17 = vsub.f32 %v2607_v62, %v1537_v14  ;;  %v1539_v18 = vmul.f32 0.6931472, %v2116_v16 }
 0x397   : > { %v2118_v19 = vpop.eup %2117  ;;  %1576 = vst [vmem:[%s2634_s8 + $0x40] sm:$0xff] %v1560_v17  ;;  %v1561_v30 = vsub.f32 %v2611_v56, %v1539_v18 }
 0x398   : > { %v1545_v20 = vmul.f32 0.6931472, %v2118_v19 }
 0x399   : > { %v2120_v21 = vpop.eup %2119  ;;  %1577 = vst [vmem:[%s2634_s8 + $0x48] sm:$0xff] %v1561_v30 }
 0x39a   : > { %v1564_v32 = vsub.f32 %v2615_v58, %v1545_v20  ;;  %v1547_v5 = vmul.f32 0.6931472, %v2120_v21 }
 0x39b   : > { %v2122_v23 = vpop.eup %2121 }
 0x39c   : > { %1580 = vst [vmem:[%s2634_s8 + $0x60] sm:$0xff] %v1564_v32  ;;  %v1565_v31 = vsub.f32 %v2619_v2, %v1547_v5  ;;  %v1549_v34 = vmul.f32 0.6931472, %v2122_v23 }
 0x39d   : > { %v2124_v36 = vpop.eup %2123 }
 0x39e   : > { %1581 = vst [vmem:[%s2634_s8 + $0x68] sm:$0xff] %v1565_v31  ;;  %v1566_v62 = vsub.f32 %v2623_v11, %v1549_v34  ;;  %v1551_v41 = vmul.f32 0.6931472, %v2124_v36 }
 0x3a0   : > { %1582 = vst [vmem:[%s2634_s8 + $0x70] sm:$0xff] %v1566_v62  ;;  %v1567_v56 = vsub.f32 %v2627_v15, %v1551_v41 }
 0x3a2   : > { %1583 = vst [vmem:[%s2634_s8 + $0x78] sm:$0xff] %v1567_v56 }
 0x3a3 PF: > { %s17_s26 = sadd.s32 1, %s2147_s26   ;;  %s2685_s24 = smov %s2143_s25 }
 0x3a4   : > { %p14_p5 = scmp.ge.s32.totalorder %s17_s26, 4   ;;  %s2686_s25 = smov %s2688_s27 }
 0x3a6   :  { %16 = sbr.rel (!%p14_p5) target bundleno = 2 (0x2), region = 95 }

</bundles_post_ra>
